<compile_context>
chip_gen: v7x
topology: tpu7x:2x2x1
jax: 0.10.0
libtpu: 0.0.40
codegen_flags: <defaults>
</compile_context>

<pallas_src>
import functools
import math

import jax
import jax.numpy as jnp
from jax.experimental import pallas as pl
from jax.experimental.pallas import tpu as pltpu


# ------------------------------------------------------------- tile helpers --

def _pick_tile(dim, target, base):
    """Largest tile <= target that divides dim and is a multiple of `base`,
    else the full dim (full-dim blocks are always legal)."""
    if dim <= target:
        return dim
    t = (target // base) * base
    while t >= base:
        if dim % t == 0:
            return t
        t -= base
    return dim


def _row_base(dtype):
    # bf16/fp16 pack two rows per sublane -> keep row tiles 16-aligned.
    return 16 if dtype in (jnp.bfloat16, jnp.float16) else 8


# ------------------------------------------------------------------ kernels --

def _matmul_kernel(*refs, activation, has_bias, add_residual, fuse_ln, ln_eps,
                   multi_k):
    """Tiled matmul with fused bias / QuickGELU / residual / LayerNorm epilogue.

    refs = (x, w, [bias], [residual], [ln_gamma], [ln_beta],
            out, [ln_out], [acc_scratch])
    """
    it = iter(refs)
    x_ref = next(it)
    w_ref = next(it)
    b_ref = next(it) if has_bias else None
    r_ref = next(it) if add_residual else None
    g_ref = next(it) if fuse_ln else None
    lb_ref = next(it) if fuse_ln else None
    o_ref = next(it)
    ln_ref = next(it) if fuse_ln else None
    acc_ref = next(it) if multi_k else None

    def epilogue(y):
        if has_bias:
            y = y + b_ref[...].astype(jnp.float32)
        if activation == "quick_gelu":        # CLIP QuickGELU: x * sigmoid(1.702 x)
            y = y * jax.nn.sigmoid(1.702 * y)
        if add_residual:
            y = y + r_ref[...].astype(jnp.float32)
        o_ref[...] = y.astype(o_ref.dtype)
        if fuse_ln:                            # tn == N, so y holds full rows
            mean = jnp.mean(y, axis=-1, keepdims=True)
            var = jnp.mean(jnp.square(y - mean), axis=-1, keepdims=True)
            z = (y - mean) * jax.lax.rsqrt(var + ln_eps)
            z = z * g_ref[...].astype(jnp.float32) + lb_ref[...].astype(jnp.float32)
            ln_ref[...] = z.astype(ln_ref.dtype)

    if multi_k:
        k = pl.program_id(2)
        nk = pl.num_programs(2)

        @pl.when(k == 0)
        def _():
            acc_ref[...] = jnp.zeros_like(acc_ref)

        acc_ref[...] += jnp.dot(x_ref[...], w_ref[...],
                                preferred_element_type=jnp.float32)

        @pl.when(k == nk - 1)
        def _():
            epilogue(acc_ref[...])
    else:
        # Fast path: whole K in one tile -> no accumulator VMEM round trip,
        # grid is fully parallel.
        epilogue(jnp.dot(x_ref[...], w_ref[...],
                         preferred_element_type=jnp.float32))


def _layernorm_kernel(x_ref, g_ref, b_ref, o_ref, *, eps):
    x = x_ref[...].astype(jnp.float32)
    mean = jnp.mean(x, axis=-1, keepdims=True)
    var = jnp.mean(jnp.square(x - mean), axis=-1, keepdims=True)
    y = (x - mean) * jax.lax.rsqrt(var + eps)
    y = y * g_ref[...].astype(jnp.float32) + b_ref[...].astype(jnp.float32)
    o_ref[...] = y.astype(o_ref.dtype)


def _attn_kernel(qkv_ref, o_ref, *, n_heads, scale):
    """Causal multi-head self-attention for one batch element.

    Reads the fused (S, 3D) QKV slab per head (native dtype straight to the
    MXU), and writes each head's (S, hd) result directly into its slice of
    the lane-dense (S, D) output block (no concatenate / relayout).
    """
    S = qkv_ref.shape[1]
    D3 = qkv_ref.shape[2]
    D = D3 // 3
    hd = D // n_heads

    row = jax.lax.broadcasted_iota(jnp.int32, (S, S), 0)
    col = jax.lax.broadcasted_iota(jnp.int32, (S, S), 1)
    # Additive causal bias, finite (no exp(-inf - -inf) risk), shared by heads.
    mask_bias = jnp.where(col <= row, 0.0, -1e30).astype(jnp.float32)

    for h in range(n_heads):                  # small static head count -> unroll
        q = qkv_ref[0, :, h * hd:(h + 1) * hd] * scale          # native dtype
        k = qkv_ref[0, :, D + h * hd:D + (h + 1) * hd]
        v = qkv_ref[0, :, 2 * D + h * hd:2 * D + (h + 1) * hd]
        s = jnp.dot(q, k.T, preferred_element_type=jnp.float32) + mask_bias
        m = jnp.max(s, axis=-1, keepdims=True)
        p = jnp.exp(s - m)
        p = p / jnp.sum(p, axis=-1, keepdims=True)               # exact softmax
        o = jnp.dot(p.astype(v.dtype), v, preferred_element_type=jnp.float32)
        o_ref[0, :, h * hd:(h + 1) * hd] = o.astype(o_ref.dtype)


# ----------------------------------------------------------------- wrappers --

def pallas_linear(x, w, b=None, activation=None, residual=None,
                  ln_params=None, ln_eps=1e-5,
                  tm_target=256, tn_target=512, tk_target=2048):
    """y = act(x @ w + b) [+ residual]; optionally also returns LayerNorm(y).

    f32 accumulation on the MXU with native-dtype operands.  When ln_params
    is given the output tile spans the full N so mean/var are computed in the
    epilogue and (raw, layernormed) are both emitted.
    """
    M, K = x.shape
    K2, N = w.shape
    assert K == K2

    has_bias = b is not None
    add_residual = residual is not None
    fuse_ln = ln_params is not None

    rb = _row_base(x.dtype)
    tm = _pick_tile(M, tm_target, rb)
    tn = N if fuse_ln else _pick_tile(N, tn_target, 128)
    tk = _pick_tile(K, tk_target, 128)
    gm, gn, gk = M // tm, N // tn, K // tk
    multi_k = gk > 1

    if multi_k:
        x_map = lambda i, j, k: (i, k)
        w_map = lambda i, j, k: (k, j)
        o_map = lambda i, j, k: (i, j)
        vec_map = lambda i, j, k: (0, j)
        grid = (gm, gn, gk)
        semantics = ("parallel", "parallel", "arbitrary")
        scratch = [pltpu.VMEM((tm, tn), jnp.float32)]
    else:
        x_map = lambda i, j: (i, 0)
        w_map = lambda i, j: (0, j)
        o_map = lambda i, j: (i, j)
        vec_map = lambda i, j: (0, j)
        grid = (gm, gn)
        semantics = ("parallel", "parallel")
        scratch = []

    in_specs = [pl.BlockSpec((tm, tk), x_map),
                pl.BlockSpec((tk, tn), w_map)]
    args = [x, w]
    if has_bias:
        in_specs.append(pl.BlockSpec((1, tn), vec_map))
        args.append(b.reshape(1, N))
    if add_residual:
        in_specs.append(pl.BlockSpec((tm, tn), o_map))
        args.append(residual)
    if fuse_ln:
        g, lb = ln_params
        in_specs.append(pl.BlockSpec((1, tn), vec_map))
        in_specs.append(pl.BlockSpec((1, tn), vec_map))
        args.append(g.reshape(1, N))
        args.append(lb.reshape(1, N))

    if fuse_ln:
        out_shape = (jax.ShapeDtypeStruct((M, N), x.dtype),
                     jax.ShapeDtypeStruct((M, N), x.dtype))
        out_specs = (pl.BlockSpec((tm, tn), o_map),
                     pl.BlockSpec((tm, tn), o_map))
    else:
        out_shape = jax.ShapeDtypeStruct((M, N), x.dtype)
        out_specs = pl.BlockSpec((tm, tn), o_map)

    kern = functools.partial(_matmul_kernel, activation=activation,
                             has_bias=has_bias, add_residual=add_residual,
                             fuse_ln=fuse_ln, ln_eps=ln_eps, multi_k=multi_k)
    return pl.pallas_call(
        kern,
        out_shape=out_shape,
        grid=grid,
        in_specs=in_specs,
        out_specs=out_specs,
        scratch_shapes=scratch,
        compiler_params=pltpu.CompilerParams(
            dimension_semantics=semantics,
            vmem_limit_bytes=48 * 1024 * 1024),
    )(*args)


def pallas_layernorm(x, g, b, eps=1e-5, tm_target=512):
    M, D = x.shape
    tm = _pick_tile(M, tm_target, _row_base(x.dtype))
    kern = functools.partial(_layernorm_kernel, eps=eps)
    return pl.pallas_call(
        kern,
        out_shape=jax.ShapeDtypeStruct((M, D), x.dtype),
        grid=(M // tm,),
        in_specs=[pl.BlockSpec((tm, D), lambda i: (i, 0)),
                  pl.BlockSpec((1, D), lambda i: (0, 0)),
                  pl.BlockSpec((1, D), lambda i: (0, 0))],
        out_specs=pl.BlockSpec((tm, D), lambda i: (i, 0)),
        compiler_params=pltpu.CompilerParams(
            dimension_semantics=("parallel",)),
    )(x, g.reshape(1, D), b.reshape(1, D))


def pallas_attention(qkv, n_heads):
    """qkv: (B, S, 3D) fused projection -> (B, S, D) attention output."""
    B, S, D3 = qkv.shape
    D = D3 // 3
    hd = D // n_heads
    scale = 1.0 / math.sqrt(hd)
    kern = functools.partial(_attn_kernel, n_heads=n_heads, scale=scale)
    return pl.pallas_call(
        kern,
        out_shape=jax.ShapeDtypeStruct((B, S, D), qkv.dtype),
        grid=(B,),
        in_specs=[pl.BlockSpec((1, S, D3), lambda i: (i, 0, 0))],
        out_specs=pl.BlockSpec((1, S, D), lambda i: (i, 0, 0)),
        compiler_params=pltpu.CompilerParams(
            dimension_semantics=("parallel",)),
    )(qkv)


# ------------------------------------------------------------- model pieces --

def text_encoder_forward(texts, params, n_heads):
    B, S = texts.shape
    x = params["token_embedding"][texts]                  # gather: plain JAX glue
    x = x + params["positional_embedding"][None, :S]      # elementwise: left to XLA
    D = x.shape[-1]

    # Pad the sequence dim once so every (B*S, D) row tile is sublane aligned.
    rb = _row_base(x.dtype)
    S_pad = ((S + rb - 1) // rb) * rb
    if S_pad != S:
        x = jnp.pad(x, ((0, 0), (0, S_pad - S), (0, 0)))   # pad rows never read
    x2d = x.reshape(B * S_pad, D)

    layers = params["layers"]
    L = len(layers)

    # Only the very first ln_1 runs standalone; every other LayerNorm is fused
    # into the matmul epilogue that produces its input.
    h = pallas_layernorm(x2d, layers[0]["ln1_g"], layers[0]["ln1_b"])

    for i, p in enumerate(layers):
        # ---- attention branch: x = x + out_proj(attn(ln_1(x))) ----
        qkv = pallas_linear(h, p["w_qkv"], p["b_qkv"])                 # (B*S, 3D)
        attn = pallas_attention(qkv.reshape(B, S_pad, 3 * D), n_heads)  # (B, S, D)
        # out-proj fused with: +bias, +residual, ln_2 of the new residual stream
        x2d, h2 = pallas_linear(attn.reshape(B * S_pad, D), p["w_out"], p["b_out"],
                                residual=x2d,
                                ln_params=(p["ln2_g"], p["ln2_b"]))

        # ---- MLP branch: x = x + proj(quick_gelu(fc(ln_2(x)))) ----
        hfc = pallas_linear(h2, p["w_fc"], p["b_fc"], activation="quick_gelu")
        # mlp-proj fused with: +bias, +residual, and the *next* LayerNorm
        # (next layer's ln_1, or ln_final after the last layer).
        if i + 1 < L:
            nxt = (layers[i + 1]["ln1_g"], layers[i + 1]["ln1_b"])
        else:
            nxt = (params["lnf_g"], params["lnf_b"])
        x2d, h = pallas_linear(hfc, p["w_proj"], p["b_proj"],
                               residual=x2d, ln_params=nxt)

    # h already holds ln_final(x) (fused into the last mlp-proj).
    xs = h.reshape(B, S_pad, D)
    eot = jnp.argmax(texts, axis=-1)                       # texts.argmax(dim=-1)
    pooled = xs[jnp.arange(B), eot]                        # (B, D) — glue gather
    return pallas_linear(pooled, params["text_projection"])    # no-bias path


# ------------------------------------------------------------ pure-JAX ref --

def reference_forward(texts, params, n_heads):
    """Plain-JAX reference of the PyTorch forward (highest matmul precision)."""
    HI = jax.lax.Precision.HIGHEST
    B, S = texts.shape
    x = params["token_embedding"][texts] + params["positional_embedding"][None, :S]
    D = x.shape[-1]
    hd = D // n_heads
    scale = 1.0 / math.sqrt(hd)

    def ln(v, g, b, eps=1e-5):
        m = v.mean(-1, keepdims=True)
        var = ((v - m) ** 2).mean(-1, keepdims=True)
        return (v - m) / jnp.sqrt(var + eps) * g + b

    mask = jnp.where(jnp.tril(jnp.ones((S, S), bool)), 0.0, -jnp.inf)
    for p in params["layers"]:
        h = ln(x, p["ln1_g"], p["ln1_b"])
        qkv = jnp.einsum("bsd,df->bsf", h, p["w_qkv"], precision=HI) + p["b_qkv"]
        q, k, v = jnp.split(qkv, 3, axis=-1)
        q = q.reshape(B, S, n_heads, hd).transpose(0, 2, 1, 3)
        k = k.reshape(B, S, n_heads, hd).transpose(0, 2, 1, 3)
        v = v.reshape(B, S, n_heads, hd).transpose(0, 2, 1, 3)
        s = jnp.einsum("bhqd,bhkd->bhqk", q, k, precision=HI) * scale + mask
        a = jax.nn.softmax(s, axis=-1)
        o = jnp.einsum("bhqk,bhkd->bhqd", a, v, precision=HI)
        o = o.transpose(0, 2, 1, 3).reshape(B, S, D)
        x = x + jnp.einsum("bsd,df->bsf", o, p["w_out"], precision=HI) + p["b_out"]
        h = ln(x, p["ln2_g"], p["ln2_b"])
        h = jnp.einsum("bsd,df->bsf", h, p["w_fc"], precision=HI) + p["b_fc"]
        h = h * jax.nn.sigmoid(1.702 * h)
        x = x + jnp.einsum("bsd,df->bsf", h, p["w_proj"], precision=HI) + p["b_proj"]
    x = ln(x, params["lnf_g"], params["lnf_b"])
    eot = jnp.argmax(texts, axis=-1)
    pooled = x[jnp.arange(B), eot]
    return jnp.dot(pooled, params["text_projection"], precision=HI)


# ----------------------------------------------------------------- params ---

def make_params(key, vocab, seq, dim, n_layers, dtype=jnp.float32):
    ks = iter(jax.random.split(key, 8 + 16 * n_layers))

    def nrm(shape, s):
        return (s * jax.random.normal(next(ks), shape)).astype(dtype)

    def gamma(shape):
        return (1.0 + 0.1 * jax.random.normal(next(ks), shape)).astype(dtype)

    params = {
        "token_embedding": nrm((vocab, dim), 0.02),
        "positional_embedding": nrm((seq, dim), 0.01),
        "lnf_g": gamma((dim,)), "lnf_b": nrm((dim,), 0.1),
        "text_projection": nrm((dim, dim), dim ** -0.5),
        "layers": [],
    }
    for _ in range(n_layers):
        params["layers"].append({
            "ln1_g": gamma((dim,)), "ln1_b": nrm((dim,), 0.1),
            "w_qkv": nrm((dim, 3 * dim), dim ** -0.5), "b_qkv": nrm((3 * dim,), 0.02),
            "w_out": nrm((dim, dim), dim ** -0.5),     "b_out": nrm((dim,), 0.02),
            "ln2_g": gamma((dim,)), "ln2_b": nrm((dim,), 0.1),
            "w_fc": nrm((dim, 4 * dim), dim ** -0.5),  "b_fc": nrm((4 * dim,), 0.02),
            "w_proj": nrm((4 * dim, dim), (4 * dim) ** -0.5), "b_proj": nrm((dim,), 0.02),
        })
    return params


# ----------------------------------------------------------------- main -----

if __name__ == "__main__":
    B, S, D, H, L, V = 2, 8, 32, 4, 2, 64   # batch, seq, width, heads, layers, vocab

    key = jax.random.PRNGKey(0)
    k_tok, k_par = jax.random.split(key)
    texts = jax.random.randint(k_tok, (B, S), 0, V, dtype=jnp.int32)
    # Params in f32 for the numerical check; kernels accept bf16 unchanged
    # (dot uses native operand dtype with f32 accumulation).
    params = make_params(k_par, V, S, D, L, dtype=jnp.float32)

    fwd = jax.jit(functools.partial(text_encoder_forward, n_heads=H))
    out = fwd(texts, params)
    jax.block_until_ready(out)

    assert out.shape == (B, D)
    assert bool(jnp.all(jnp.isfinite(out)))

    # Numerical parity vs a plain-JAX reference of the PyTorch forward.
    ref = reference_forward(texts, params, H)
    assert bool(jnp.allclose(out, ref, atol=1e-3, rtol=1e-2)), (
        f"max abs err {float(jnp.max(jnp.abs(out - ref)))}")

    # Smoke-test the K-split accumulate path (+ fused LN epilogue) of the
    # matmul kernel, which the tiny model above doesn't exercise.
    km, kk, kn = 32, 256, 128
    xa = jax.random.normal(jax.random.PRNGKey(1), (km, kk), jnp.float32)
    wa = 0.05 * jax.random.normal(jax.random.PRNGKey(2), (kk, kn), jnp.float32)
    ba = 0.1 * jax.random.normal(jax.random.PRNGKey(3), (kn,), jnp.float32)
    ra = jax.random.normal(jax.random.PRNGKey(4), (km, kn), jnp.float32)
    ga = jnp.ones((kn,), jnp.float32)
    be = jnp.zeros((kn,), jnp.float32)
    y_raw, y_ln = pallas_linear(xa, wa, ba, residual=ra, ln_params=(ga, be),
                                tk_target=128)   # forces gk=2 -> accumulate path
    jax.block_until_ready(y_ln)
    ref_raw = jnp.dot(xa, wa, precision=jax.lax.Precision.HIGHEST) + ba + ra
    mu = ref_raw.mean(-1, keepdims=True)
    var = ((ref_raw - mu) ** 2).mean(-1, keepdims=True)
    ref_ln = (ref_raw - mu) / jnp.sqrt(var + 1e-5) * ga + be
    assert bool(jnp.allclose(y_raw, ref_raw, atol=1e-3, rtol=1e-2))
    assert bool(jnp.allclose(y_ln, ref_ln, atol=1e-3, rtol=1e-2))

    print("KERNEL_OK")
</pallas_src>

<mosaic_0001>
module attributes {stable_mosaic.version = 11 : i64} {
  func.func @_matmul_kernel(%arg0: i32, %arg1: i32, %arg2: memref<16x32xf32, #tpu.memory_space<vmem>>, %arg3: memref<32x96xf32, #tpu.memory_space<vmem>>, %arg4: memref<1x96xf32, #tpu.memory_space<vmem>>, %arg5: memref<16x96xf32, #tpu.memory_space<vmem>>) attributes {dimension_semantics = [#tpu.dimension_semantics<parallel>, #tpu.dimension_semantics<parallel>], iteration_bounds = array<i64: 1, 1>, scalar_prefetch = 0 : i64, scratch_operands = 0 : i64, tpu.core_type = #tpu.core_type<tc>, window_params = [{transform_indices = @transform_0, window_bounds = array<i64: 16, 32>}, {transform_indices = @transform_1, window_bounds = array<i64: 32, 96>}, {transform_indices = @transform_2, window_bounds = array<i64: 1, 96>}, {transform_indices = @transform_3, window_bounds = array<i64: 16, 96>}]} {
    %c0 = arith.constant 0 : index
    %c0_0 = arith.constant 0 : index
    %0 = vector.load %arg2[%c0, %c0_0] : memref<16x32xf32, #tpu.memory_space<vmem>>, vector<16x32xf32>
    %c0_1 = arith.constant 0 : index
    %c0_2 = arith.constant 0 : index
    %1 = vector.load %arg3[%c0_1, %c0_2] : memref<32x96xf32, #tpu.memory_space<vmem>>, vector<32x96xf32>
    %cst = arith.constant dense<0.000000e+00> : vector<16x96xf32>
    %2 = tpu.matmul %0, %1, %cst {dimension_numbers = #tpu.dot_dimension_numbers<[1], [0], [0], [1], [0, 0, 1, 1], [], []>} : vector<16x32xf32>, vector<32x96xf32>, vector<16x96xf32> -> vector<16x96xf32>
    %c0_3 = arith.constant 0 : index
    %c0_4 = arith.constant 0 : index
    %3 = vector.load %arg4[%c0_3, %c0_4] : memref<1x96xf32, #tpu.memory_space<vmem>>, vector<1x96xf32>
    %4 = vector.broadcast %3 : vector<1x96xf32> to vector<16x96xf32>
    %5 = arith.addf %2, %4 : vector<16x96xf32>
    %c0_5 = arith.constant 0 : index
    %c0_6 = arith.constant 0 : index
    %6 = vector.load %arg5[%c0_5, %c0_6] : memref<16x96xf32, #tpu.memory_space<vmem>>, vector<16x96xf32>
    tpu.vector_store %arg5[%c0_5, %c0_6], %5 {strides = array<i32>} : memref<16x96xf32, #tpu.memory_space<vmem>>, vector<16x96xf32>,
    return
  }
  func.func @transform_0(%arg0: i32, %arg1: i32) -> (i32, i32) {
    %c0_i32 = arith.constant 0 : i32
    %c0_i32_0 = arith.constant 0 : i32
    return %arg0, %c0_i32 : i32, i32
  }
  func.func @transform_1(%arg0: i32, %arg1: i32) -> (i32, i32) {
    %c0_i32 = arith.constant 0 : i32
    %c0_i32_0 = arith.constant 0 : i32
    return %c0_i32, %arg1 : i32, i32
  }
  func.func @transform_2(%arg0: i32, %arg1: i32) -> (i32, i32) {
    %c0_i32 = arith.constant 0 : i32
    %c0_i32_0 = arith.constant 0 : i32
    return %c0_i32, %arg1 : i32, i32
  }
  func.func @transform_3(%arg0: i32, %arg1: i32) -> (i32, i32) {
    %c0_i32 = arith.constant 0 : i32
    return %arg0, %arg1 : i32, i32
  }
}

module attributes {stable_mosaic.version = 11 : i64} {
  func.func @_layernorm_kernel(%arg0: i32, %arg1: memref<16x32xf32, #tpu.memory_space<vmem>>, %arg2: memref<1x32xf32, #tpu.memory_space<vmem>>, %arg3: memref<1x32xf32, #tpu.memory_space<vmem>>, %arg4: memref<16x32xf32, #tpu.memory_space<vmem>>) attributes {dimension_semantics = [#tpu.dimension_semantics<parallel>], iteration_bounds = array<i64: 1>, scalar_prefetch = 0 : i64, scratch_operands = 0 : i64, tpu.core_type = #tpu.core_type<tc>, window_params = [{transform_indices = @transform_0, window_bounds = array<i64: 16, 32>}, {pipeline_mode = #tpu.pipeline_mode<synchronous>, transform_indices = @transform_1, window_bounds = array<i64: 1, 32>}, {pipeline_mode = #tpu.pipeline_mode<synchronous>, transform_indices = @transform_2, window_bounds = array<i64: 1, 32>}, {transform_indices = @transform_3, window_bounds = array<i64: 16, 32>}]} {
    %c0 = arith.constant 0 : index
    %c0_0 = arith.constant 0 : index
    %0 = vector.load %arg1[%c0, %c0_0] : memref<16x32xf32, #tpu.memory_space<vmem>>, vector<16x32xf32>
    %cst = arith.constant dense<0.000000e+00> : vector<16xf32>
    %1 = vector.multi_reduction <add>, %0, %cst [1] : vector<16x32xf32> to vector<16xf32>
    %2 = vector.shape_cast %1 : vector<16xf32> to vector<16x1xf32>
    %cst_1 = arith.constant 3.200000e+01 : f32
    %3 = vector.broadcast %cst_1 : f32 to vector<16x1xf32>
    %4 = arith.divf %2, %3 : vector<16x1xf32>
    %5 = vector.broadcast %4 : vector<16x1xf32> to vector<16x32xf32>
    %6 = arith.subf %0, %5 : vector<16x32xf32>
    %7 = arith.mulf %6, %6 : vector<16x32xf32>
    %cst_2 = arith.constant dense<0.000000e+00> : vector<16xf32>
    %8 = vector.multi_reduction <add>, %7, %cst_2 [1] : vector<16x32xf32> to vector<16xf32>
    %9 = vector.shape_cast %8 : vector<16xf32> to vector<16x1xf32>
    %cst_3 = arith.constant 3.200000e+01 : f32
    %10 = vector.broadcast %cst_3 : f32 to vector<16x1xf32>
    %11 = arith.divf %9, %10 : vector<16x1xf32>
    %12 = vector.broadcast %4 : vector<16x1xf32> to vector<16x32xf32>
    %13 = arith.subf %0, %12 : vector<16x32xf32>
    %cst_4 = arith.constant 9.99999974E-6 : f32
    %14 = vector.broadcast %cst_4 : f32 to vector<16x1xf32>
    %15 = arith.addf %11, %14 : vector<16x1xf32>
    %16 = math.rsqrt %15 : vector<16x1xf32>
    %17 = vector.broadcast %16 : vector<16x1xf32> to vector<16x32xf32>
    %18 = arith.mulf %13, %17 : vector<16x32xf32>
    %c0_5 = arith.constant 0 : index
    %c0_6 = arith.constant 0 : index
    %19 = vector.load %arg2[%c0_5, %c0_6] : memref<1x32xf32, #tpu.memory_space<vmem>>, vector<1x32xf32>
    %20 = vector.broadcast %19 : vector<1x32xf32> to vector<16x32xf32>
    %21 = arith.mulf %18, %20 : vector<16x32xf32>
    %c0_7 = arith.constant 0 : index
    %c0_8 = arith.constant 0 : index
    %22 = vector.load %arg3[%c0_7, %c0_8] : memref<1x32xf32, #tpu.memory_space<vmem>>, vector<1x32xf32>
    %23 = vector.broadcast %22 : vector<1x32xf32> to vector<16x32xf32>
    %24 = arith.addf %21, %23 : vector<16x32xf32>
    %c0_9 = arith.constant 0 : index
    %c0_10 = arith.constant 0 : index
    %25 = vector.load %arg4[%c0_9, %c0_10] : memref<16x32xf32, #tpu.memory_space<vmem>>, vector<16x32xf32>
    tpu.vector_store %arg4[%c0_9, %c0_10], %24 {strides = array<i32>} : memref<16x32xf32, #tpu.memory_space<vmem>>, vector<16x32xf32>,
    return
  }
  func.func @transform_0(%arg0: i32) -> (i32, i32) {
    %c0_i32 = arith.constant 0 : i32
    %c0_i32_0 = arith.constant 0 : i32
    return %arg0, %c0_i32 : i32, i32
  }
  func.func @transform_1(%arg0: i32) -> (i32, i32) {
    %c0_i32 = arith.constant 0 : i32
    %c0_i32_0 = arith.constant 0 : i32
    %c0_i32_1 = arith.constant 0 : i32
    return %c0_i32, %c0_i32_0 : i32, i32
  }
  func.func @transform_2(%arg0: i32) -> (i32, i32) {
    %c0_i32 = arith.constant 0 : i32
    %c0_i32_0 = arith.constant 0 : i32
    %c0_i32_1 = arith.constant 0 : i32
    return %c0_i32, %c0_i32_0 : i32, i32
  }
  func.func @transform_3(%arg0: i32) -> (i32, i32) {
    %c0_i32 = arith.constant 0 : i32
    %c0_i32_0 = arith.constant 0 : i32
    return %arg0, %c0_i32 : i32, i32
  }
}

module attributes {stable_mosaic.version = 11 : i64} {
  func.func @_matmul_kernel(%arg0: i32, %arg1: i32, %arg2: memref<16x32xf32, #tpu.memory_space<vmem>>, %arg3: memref<32x32xf32, #tpu.memory_space<vmem>>, %arg4: memref<1x32xf32, #tpu.memory_space<vmem>>, %arg5: memref<16x32xf32, #tpu.memory_space<vmem>>, %arg6: memref<1x32xf32, #tpu.memory_space<vmem>>, %arg7: memref<1x32xf32, #tpu.memory_space<vmem>>, %arg8: memref<16x32xf32, #tpu.memory_space<vmem>>, %arg9: memref<16x32xf32, #tpu.memory_space<vmem>>) attributes {dimension_semantics = [#tpu.dimension_semantics<parallel>, #tpu.dimension_semantics<parallel>], iteration_bounds = array<i64: 1, 1>, scalar_prefetch = 0 : i64, scratch_operands = 0 : i64, tpu.core_type = #tpu.core_type<tc>, window_params = [{transform_indices = @transform_0, window_bounds = array<i64: 16, 32>}, {transform_indices = @transform_1, window_bounds = array<i64: 32, 32>}, {transform_indices = @transform_2, window_bounds = array<i64: 1, 32>}, {transform_indices = @transform_3, window_bounds = array<i64: 16, 32>}, {transform_indices = @transform_4, window_bounds = array<i64: 1, 32>}, {transform_indices = @transform_5, window_bounds = array<i64: 1, 32>}, {transform_indices = @transform_6, window_bounds = array<i64: 16, 32>}, {transform_indices = @transform_7, window_bounds = array<i64: 16, 32>}]} {
    %c0 = arith.constant 0 : index
    %c0_0 = arith.constant 0 : index
    %0 = vector.load %arg2[%c0, %c0_0] : memref<16x32xf32, #tpu.memory_space<vmem>>, vector<16x32xf32>
    %c0_1 = arith.constant 0 : index
    %c0_2 = arith.constant 0 : index
    %1 = vector.load %arg3[%c0_1, %c0_2] : memref<32x32xf32, #tpu.memory_space<vmem>>, vector<32x32xf32>
    %cst = arith.constant dense<0.000000e+00> : vector<16x32xf32>
    %2 = tpu.matmul %0, %1, %cst {dimension_numbers = #tpu.dot_dimension_numbers<[1], [0], [0], [1], [0, 0, 1, 1], [], []>} : vector<16x32xf32>, vector<32x32xf32>, vector<16x32xf32> -> vector<16x32xf32>
    %c0_3 = arith.constant 0 : index
    %c0_4 = arith.constant 0 : index
    %3 = vector.load %arg4[%c0_3, %c0_4] : memref<1x32xf32, #tpu.memory_space<vmem>>, vector<1x32xf32>
    %4 = vector.broadcast %3 : vector<1x32xf32> to vector<16x32xf32>
    %5 = arith.addf %2, %4 : vector<16x32xf32>
    %c0_5 = arith.constant 0 : index
    %c0_6 = arith.constant 0 : index
    %6 = vector.load %arg5[%c0_5, %c0_6] : memref<16x32xf32, #tpu.memory_space<vmem>>, vector<16x32xf32>
    %7 = arith.addf %5, %6 : vector<16x32xf32>
    %c0_7 = arith.constant 0 : index
    %c0_8 = arith.constant 0 : index
    %8 = vector.load %arg8[%c0_7, %c0_8] : memref<16x32xf32, #tpu.memory_space<vmem>>, vector<16x32xf32>
    tpu.vector_store %arg8[%c0_7, %c0_8], %7 {strides = array<i32>} : memref<16x32xf32, #tpu.memory_space<vmem>>, vector<16x32xf32>,
    %cst_9 = arith.constant dense<0.000000e+00> : vector<16xf32>
    %9 = vector.multi_reduction <add>, %7, %cst_9 [1] : vector<16x32xf32> to vector<16xf32>
    %10 = vector.shape_cast %9 : vector<16xf32> to vector<16x1xf32>
    %cst_10 = arith.constant 3.200000e+01 : f32
    %11 = vector.broadcast %cst_10 : f32 to vector<16x1xf32>
    %12 = arith.divf %10, %11 : vector<16x1xf32>
    %13 = vector.broadcast %12 : vector<16x1xf32> to vector<16x32xf32>
    %14 = arith.subf %7, %13 : vector<16x32xf32>
    %15 = arith.mulf %14, %14 : vector<16x32xf32>
    %cst_11 = arith.constant dense<0.000000e+00> : vector<16xf32>
    %16 = vector.multi_reduction <add>, %15, %cst_11 [1] : vector<16x32xf32> to vector<16xf32>
    %17 = vector.shape_cast %16 : vector<16xf32> to vector<16x1xf32>
    %cst_12 = arith.constant 3.200000e+01 : f32
    %18 = vector.broadcast %cst_12 : f32 to vector<16x1xf32>
    %19 = arith.divf %17, %18 : vector<16x1xf32>
    %20 = vector.broadcast %12 : vector<16x1xf32> to vector<16x32xf32>
    %21 = arith.subf %7, %20 : vector<16x32xf32>
    %cst_13 = arith.constant 9.99999974E-6 : f32
    %22 = vector.broadcast %cst_13 : f32 to vector<16x1xf32>
    %23 = arith.addf %19, %22 : vector<16x1xf32>
    %24 = math.rsqrt %23 : vector<16x1xf32>
    %25 = vector.broadcast %24 : vector<16x1xf32> to vector<16x32xf32>
    %26 = arith.mulf %21, %25 : vector<16x32xf32>
    %c0_14 = arith.constant 0 : index
    %c0_15 = arith.constant 0 : index
    %27 = vector.load %arg6[%c0_14, %c0_15] : memref<1x32xf32, #tpu.memory_space<vmem>>, vector<1x32xf32>
    %28 = vector.broadcast %27 : vector<1x32xf32> to vector<16x32xf32>
    %29 = arith.mulf %26, %28 : vector<16x32xf32>
    %c0_16 = arith.constant 0 : index
    %c0_17 = arith.constant 0 : index
    %30 = vector.load %arg7[%c0_16, %c0_17] : memref<1x32xf32, #tpu.memory_space<vmem>>, vector<1x32xf32>
    %31 = vector.broadcast %30 : vector<1x32xf32> to vector<16x32xf32>
    %32 = arith.addf %29, %31 : vector<16x32xf32>
    %c0_18 = arith.constant 0 : index
    %c0_19 = arith.constant 0 : index
    %33 = vector.load %arg9[%c0_18, %c0_19] : memref<16x32xf32, #tpu.memory_space<vmem>>, vector<16x32xf32>
    tpu.vector_store %arg9[%c0_18, %c0_19], %32 {strides = array<i32>} : memref<16x32xf32, #tpu.memory_space<vmem>>, vector<16x32xf32>,
    return
  }
  func.func @transform_0(%arg0: i32, %arg1: i32) -> (i32, i32) {
    %c0_i32 = arith.constant 0 : i32
    %c0_i32_0 = arith.constant 0 : i32
    return %arg0, %c0_i32 : i32, i32
  }
  func.func @transform_1(%arg0: i32, %arg1: i32) -> (i32, i32) {
    %c0_i32 = arith.constant 0 : i32
    %c0_i32_0 = arith.constant 0 : i32
    return %c0_i32, %arg1 : i32, i32
  }
  func.func @transform_2(%arg0: i32, %arg1: i32) -> (i32, i32) {
    %c0_i32 = arith.constant 0 : i32
    %c0_i32_0 = arith.constant 0 : i32
    return %c0_i32, %arg1 : i32, i32
  }
  func.func @transform_3(%arg0: i32, %arg1: i32) -> (i32, i32) {
    %c0_i32 = arith.constant 0 : i32
    return %arg0, %arg1 : i32, i32
  }
  func.func @transform_4(%arg0: i32, %arg1: i32) -> (i32, i32) {
    %c0_i32 = arith.constant 0 : i32
    %c0_i32_0 = arith.constant 0 : i32
    return %c0_i32, %arg1 : i32, i32
  }
  func.func @transform_5(%arg0: i32, %arg1: i32) -> (i32, i32) {
    %c0_i32 = arith.constant 0 : i32
    %c0_i32_0 = arith.constant 0 : i32
    return %c0_i32, %arg1 : i32, i32
  }
  func.func @transform_6(%arg0: i32, %arg1: i32) -> (i32, i32) {
    %c0_i32 = arith.constant 0 : i32
    return %arg0, %arg1 : i32, i32
  }
  func.func @transform_7(%arg0: i32, %arg1: i32) -> (i32, i32) {
    %c0_i32 = arith.constant 0 : i32
    return %arg0, %arg1 : i32, i32
  }
}

module attributes {stable_mosaic.version = 11 : i64} {
  func.func @_attn_kernel(%arg0: i32, %arg1: memref<1x8x96xf32, #tpu.memory_space<vmem>>, %arg2: memref<1x8x32xf32, #tpu.memory_space<vmem>>) attributes {dimension_semantics = [#tpu.dimension_semantics<parallel>], iteration_bounds = array<i64: 2>, scalar_prefetch = 0 : i64, scratch_operands = 0 : i64, tpu.core_type = #tpu.core_type<tc>, window_params = [{transform_indices = @transform_0, window_bounds = array<i64: 1, 8, 96>}, {transform_indices = @transform_1, window_bounds = array<i64: 1, 8, 32>}]} {
    %0 = tpu.iota {dimensions = array<i32: 0>} : vector<8x8xi32>
    %1 = tpu.iota {dimensions = array<i32: 1>} : vector<8x8xi32>
    %2 = arith.cmpi sle, %1, %0 : vector<8x8xi32>
    %cst = arith.constant 0.000000e+00 : f32
    %cst_0 = arith.constant -1.000000e+30 : f32
    %3 = vector.broadcast %cst : f32 to vector<8x8xf32>
    %4 = vector.broadcast %cst_0 : f32 to vector<8x8xf32>
    %5 = arith.select %2, %3, %4 : vector<8x8xi1>, vector<8x8xf32>
    %c0 = arith.constant 0 : index
    %c0_1 = arith.constant 0 : index
    %c0_2 = arith.constant 0 : index
    %6 = vector.load %arg1[%c0, %c0_1, %c0_2] : memref<1x8x96xf32, #tpu.memory_space<vmem>>, vector<1x8x8xf32>
    %7 = vector.shape_cast %6 : vector<1x8x8xf32> to vector<8x8xf32>
    %cst_3 = arith.constant 0.353553385 : f32
    %8 = vector.broadcast %cst_3 : f32 to vector<8x8xf32>
    %9 = arith.mulf %7, %8 : vector<8x8xf32>
    %c0_4 = arith.constant 0 : index
    %c0_5 = arith.constant 0 : index
    %c32 = arith.constant 32 : index
    %10 = vector.load %arg1[%c0_4, %c0_5, %c32] : memref<1x8x96xf32, #tpu.memory_space<vmem>>, vector<1x8x8xf32>
    %11 = vector.shape_cast %10 : vector<1x8x8xf32> to vector<8x8xf32>
    %c0_6 = arith.constant 0 : index
    %c0_7 = arith.constant 0 : index
    %c64 = arith.constant 64 : index
    %12 = vector.load %arg1[%c0_6, %c0_7, %c64] : memref<1x8x96xf32, #tpu.memory_space<vmem>>, vector<1x8x8xf32>
    %13 = vector.shape_cast %12 : vector<1x8x8xf32> to vector<8x8xf32>
    %14 = tpu.transpose %11, [1, 0] : vector<8x8xf32> -> vector<8x8xf32>
    %cst_8 = arith.constant dense<0.000000e+00> : vector<8x8xf32>
    %15 = tpu.matmul %9, %14, %cst_8 {dimension_numbers = #tpu.dot_dimension_numbers<[1], [0], [0], [1], [0, 0, 1, 1], [], []>} : vector<8x8xf32>, vector<8x8xf32>, vector<8x8xf32> -> vector<8x8xf32>
    %16 = arith.addf %15, %5 : vector<8x8xf32>
    %cst_9 = arith.constant dense<0xFF800000> : vector<8xf32>
    %17 = vector.multi_reduction <maximumf>, %16, %cst_9 [1] : vector<8x8xf32> to vector<8xf32>
    %18 = vector.shape_cast %17 : vector<8xf32> to vector<8x1xf32>
    %19 = vector.broadcast %18 : vector<8x1xf32> to vector<8x8xf32>
    %20 = arith.subf %16, %19 : vector<8x8xf32>
    %21 = math.exp %20 : vector<8x8xf32>
    %cst_10 = arith.constant dense<0.000000e+00> : vector<8xf32>
    %22 = vector.multi_reduction <add>, %21, %cst_10 [1] : vector<8x8xf32> to vector<8xf32>
    %23 = vector.shape_cast %22 : vector<8xf32> to vector<8x1xf32>
    %24 = vector.broadcast %23 : vector<8x1xf32> to vector<8x8xf32>
    %25 = arith.divf %21, %24 : vector<8x8xf32>
    %cst_11 = arith.constant dense<0.000000e+00> : vector<8x8xf32>
    %26 = tpu.matmul %25, %13, %cst_11 {dimension_numbers = #tpu.dot_dimension_numbers<[1], [0], [0], [1], [0, 0, 1, 1], [], []>} : vector<8x8xf32>, vector<8x8xf32>, vector<8x8xf32> -> vector<8x8xf32>
    %c0_12 = arith.constant 0 : index
    %c0_13 = arith.constant 0 : index
    %c0_14 = arith.constant 0 : index
    %27 = vector.load %arg2[%c0_12, %c0_13, %c0_14] : memref<1x8x32xf32, #tpu.memory_space<vmem>>, vector<1x8x8xf32>
    %28 = vector.shape_cast %27 : vector<1x8x8xf32> to vector<8x8xf32>
    %29 = vector.shape_cast %26 : vector<8x8xf32> to vector<1x8x8xf32>
    tpu.vector_store %arg2[%c0_12, %c0_13, %c0_14], %29 {strides = array<i32>} : memref<1x8x32xf32, #tpu.memory_space<vmem>>, vector<1x8x8xf32>,
    %c0_15 = arith.constant 0 : index
    %c0_16 = arith.constant 0 : index
    %c8 = arith.constant 8 : index
    %30 = vector.load %arg1[%c0_15, %c0_16, %c8] : memref<1x8x96xf32, #tpu.memory_space<vmem>>, vector<1x8x8xf32>
    %31 = vector.shape_cast %30 : vector<1x8x8xf32> to vector<8x8xf32>
    %cst_17 = arith.constant 0.353553385 : f32
    %32 = vector.broadcast %cst_17 : f32 to vector<8x8xf32>
    %33 = arith.mulf %31, %32 : vector<8x8xf32>
    %c0_18 = arith.constant 0 : index
    %c0_19 = arith.constant 0 : index
    %c40 = arith.constant 40 : index
    %34 = vector.load %arg1[%c0_18, %c0_19, %c40] : memref<1x8x96xf32, #tpu.memory_space<vmem>>, vector<1x8x8xf32>
    %35 = vector.shape_cast %34 : vector<1x8x8xf32> to vector<8x8xf32>
    %c0_20 = arith.constant 0 : index
    %c0_21 = arith.constant 0 : index
    %c72 = arith.constant 72 : index
    %36 = vector.load %arg1[%c0_20, %c0_21, %c72] : memref<1x8x96xf32, #tpu.memory_space<vmem>>, vector<1x8x8xf32>
    %37 = vector.shape_cast %36 : vector<1x8x8xf32> to vector<8x8xf32>
    %38 = tpu.transpose %35, [1, 0] : vector<8x8xf32> -> vector<8x8xf32>
    %cst_22 = arith.constant dense<0.000000e+00> : vector<8x8xf32>
    %39 = tpu.matmul %33, %38, %cst_22 {dimension_numbers = #tpu.dot_dimension_numbers<[1], [0], [0], [1], [0, 0, 1, 1], [], []>} : vector<8x8xf32>, vector<8x8xf32>, vector<8x8xf32> -> vector<8x8xf32>
    %40 = arith.addf %39, %5 : vector<8x8xf32>
    %cst_23 = arith.constant dense<0xFF800000> : vector<8xf32>
    %41 = vector.multi_reduction <maximumf>, %40, %cst_23 [1] : vector<8x8xf32> to vector<8xf32>
    %42 = vector.shape_cast %41 : vector<8xf32> to vector<8x1xf32>
    %43 = vector.broadcast %42 : vector<8x1xf32> to vector<8x8xf32>
    %44 = arith.subf %40, %43 : vector<8x8xf32>
    %45 = math.exp %44 : vector<8x8xf32>
    %cst_24 = arith.constant dense<0.000000e+00> : vector<8xf32>
    %46 = vector.multi_reduction <add>, %45, %cst_24 [1] : vector<8x8xf32> to vector<8xf32>
    %47 = vector.shape_cast %46 : vector<8xf32> to vector<8x1xf32>
    %48 = vector.broadcast %47 : vector<8x1xf32> to vector<8x8xf32>
    %49 = arith.divf %45, %48 : vector<8x8xf32>
    %cst_25 = arith.constant dense<0.000000e+00> : vector<8x8xf32>
    %50 = tpu.matmul %49, %37, %cst_25 {dimension_numbers = #tpu.dot_dimension_numbers<[1], [0], [0], [1], [0, 0, 1, 1], [], []>} : vector<8x8xf32>, vector<8x8xf32>, vector<8x8xf32> -> vector<8x8xf32>
    %c0_26 = arith.constant 0 : index
    %c0_27 = arith.constant 0 : index
    %c8_28 = arith.constant 8 : index
    %51 = vector.load %arg2[%c0_26, %c0_27, %c8_28] : memref<1x8x32xf32, #tpu.memory_space<vmem>>, vector<1x8x8xf32>
    %52 = vector.shape_cast %51 : vector<1x8x8xf32> to vector<8x8xf32>
    %53 = vector.shape_cast %50 : vector<8x8xf32> to vector<1x8x8xf32>
    tpu.vector_store %arg2[%c0_26, %c0_27, %c8_28], %53 {strides = array<i32>} : memref<1x8x32xf32, #tpu.memory_space<vmem>>, vector<1x8x8xf32>,
    %c0_29 = arith.constant 0 : index
    %c0_30 = arith.constant 0 : index
    %c16 = arith.constant 16 : index
    %54 = vector.load %arg1[%c0_29, %c0_30, %c16] : memref<1x8x96xf32, #tpu.memory_space<vmem>>, vector<1x8x8xf32>
    %55 = vector.shape_cast %54 : vector<1x8x8xf32> to vector<8x8xf32>
    %cst_31 = arith.constant 0.353553385 : f32
    %56 = vector.broadcast %cst_31 : f32 to vector<8x8xf32>
    %57 = arith.mulf %55, %56 : vector<8x8xf32>
    %c0_32 = arith.constant 0 : index
    %c0_33 = arith.constant 0 : index
    %c48 = arith.constant 48 : index
    %58 = vector.load %arg1[%c0_32, %c0_33, %c48] : memref<1x8x96xf32, #tpu.memory_space<vmem>>, vector<1x8x8xf32>
    %59 = vector.shape_cast %58 : vector<1x8x8xf32> to vector<8x8xf32>
    %c0_34 = arith.constant 0 : index
    %c0_35 = arith.constant 0 : index
    %c80 = arith.constant 80 : index
    %60 = vector.load %arg1[%c0_34, %c0_35, %c80] : memref<1x8x96xf32, #tpu.memory_space<vmem>>, vector<1x8x8xf32>
    %61 = vector.shape_cast %60 : vector<1x8x8xf32> to vector<8x8xf32>
    %62 = tpu.transpose %59, [1, 0] : vector<8x8xf32> -> vector<8x8xf32>
    %cst_36 = arith.constant dense<0.000000e+00> : vector<8x8xf32>
    %63 = tpu.matmul %57, %62, %cst_36 {dimension_numbers = #tpu.dot_dimension_numbers<[1], [0], [0], [1], [0, 0, 1, 1], [], []>} : vector<8x8xf32>, vector<8x8xf32>, vector<8x8xf32> -> vector<8x8xf32>
    %64 = arith.addf %63, %5 : vector<8x8xf32>
    %cst_37 = arith.constant dense<0xFF800000> : vector<8xf32>
    %65 = vector.multi_reduction <maximumf>, %64, %cst_37 [1] : vector<8x8xf32> to vector<8xf32>
    %66 = vector.shape_cast %65 : vector<8xf32> to vector<8x1xf32>
    %67 = vector.broadcast %66 : vector<8x1xf32> to vector<8x8xf32>
    %68 = arith.subf %64, %67 : vector<8x8xf32>
    %69 = math.exp %68 : vector<8x8xf32>
    %cst_38 = arith.constant dense<0.000000e+00> : vector<8xf32>
    %70 = vector.multi_reduction <add>, %69, %cst_38 [1] : vector<8x8xf32> to vector<8xf32>
    %71 = vector.shape_cast %70 : vector<8xf32> to vector<8x1xf32>
    %72 = vector.broadcast %71 : vector<8x1xf32> to vector<8x8xf32>
    %73 = arith.divf %69, %72 : vector<8x8xf32>
    %cst_39 = arith.constant dense<0.000000e+00> : vector<8x8xf32>
    %74 = tpu.matmul %73, %61, %cst_39 {dimension_numbers = #tpu.dot_dimension_numbers<[1], [0], [0], [1], [0, 0, 1, 1], [], []>} : vector<8x8xf32>, vector<8x8xf32>, vector<8x8xf32> -> vector<8x8xf32>
    %c0_40 = arith.constant 0 : index
    %c0_41 = arith.constant 0 : index
    %c16_42 = arith.constant 16 : index
    %75 = vector.load %arg2[%c0_40, %c0_41, %c16_42] : memref<1x8x32xf32, #tpu.memory_space<vmem>>, vector<1x8x8xf32>
    %76 = vector.shape_cast %75 : vector<1x8x8xf32> to vector<8x8xf32>
    %77 = vector.shape_cast %74 : vector<8x8xf32> to vector<1x8x8xf32>
    tpu.vector_store %arg2[%c0_40, %c0_41, %c16_42], %77 {strides = array<i32>} : memref<1x8x32xf32, #tpu.memory_space<vmem>>, vector<1x8x8xf32>,
    %c0_43 = arith.constant 0 : index
    %c0_44 = arith.constant 0 : index
    %c24 = arith.constant 24 : index
    %78 = vector.load %arg1[%c0_43, %c0_44, %c24] : memref<1x8x96xf32, #tpu.memory_space<vmem>>, vector<1x8x8xf32>
    %79 = vector.shape_cast %78 : vector<1x8x8xf32> to vector<8x8xf32>
    %cst_45 = arith.constant 0.353553385 : f32
    %80 = vector.broadcast %cst_45 : f32 to vector<8x8xf32>
    %81 = arith.mulf %79, %80 : vector<8x8xf32>
    %c0_46 = arith.constant 0 : index
    %c0_47 = arith.constant 0 : index
    %c56 = arith.constant 56 : index
    %82 = vector.load %arg1[%c0_46, %c0_47, %c56] : memref<1x8x96xf32, #tpu.memory_space<vmem>>, vector<1x8x8xf32>
    %83 = vector.shape_cast %82 : vector<1x8x8xf32> to vector<8x8xf32>
    %c0_48 = arith.constant 0 : index
    %c0_49 = arith.constant 0 : index
    %c88 = arith.constant 88 : index
    %84 = vector.load %arg1[%c0_48, %c0_49, %c88] : memref<1x8x96xf32, #tpu.memory_space<vmem>>, vector<1x8x8xf32>
    %85 = vector.shape_cast %84 : vector<1x8x8xf32> to vector<8x8xf32>
    %86 = tpu.transpose %83, [1, 0] : vector<8x8xf32> -> vector<8x8xf32>
    %cst_50 = arith.constant dense<0.000000e+00> : vector<8x8xf32>
    %87 = tpu.matmul %81, %86, %cst_50 {dimension_numbers = #tpu.dot_dimension_numbers<[1], [0], [0], [1], [0, 0, 1, 1], [], []>} : vector<8x8xf32>, vector<8x8xf32>, vector<8x8xf32> -> vector<8x8xf32>
    %88 = arith.addf %87, %5 : vector<8x8xf32>
    %cst_51 = arith.constant dense<0xFF800000> : vector<8xf32>
    %89 = vector.multi_reduction <maximumf>, %88, %cst_51 [1] : vector<8x8xf32> to vector<8xf32>
    %90 = vector.shape_cast %89 : vector<8xf32> to vector<8x1xf32>
    %91 = vector.broadcast %90 : vector<8x1xf32> to vector<8x8xf32>
    %92 = arith.subf %88, %91 : vector<8x8xf32>
    %93 = math.exp %92 : vector<8x8xf32>
    %cst_52 = arith.constant dense<0.000000e+00> : vector<8xf32>
    %94 = vector.multi_reduction <add>, %93, %cst_52 [1] : vector<8x8xf32> to vector<8xf32>
    %95 = vector.shape_cast %94 : vector<8xf32> to vector<8x1xf32>
    %96 = vector.broadcast %95 : vector<8x1xf32> to vector<8x8xf32>
    %97 = arith.divf %93, %96 : vector<8x8xf32>
    %cst_53 = arith.constant dense<0.000000e+00> : vector<8x8xf32>
    %98 = tpu.matmul %97, %85, %cst_53 {dimension_numbers = #tpu.dot_dimension_numbers<[1], [0], [0], [1], [0, 0, 1, 1], [], []>} : vector<8x8xf32>, vector<8x8xf32>, vector<8x8xf32> -> vector<8x8xf32>
    %c0_54 = arith.constant 0 : index
    %c0_55 = arith.constant 0 : index
    %c24_56 = arith.constant 24 : index
    %99 = vector.load %arg2[%c0_54, %c0_55, %c24_56] : memref<1x8x32xf32, #tpu.memory_space<vmem>>, vector<1x8x8xf32>
    %100 = vector.shape_cast %99 : vector<1x8x8xf32> to vector<8x8xf32>
    %101 = vector.shape_cast %98 : vector<8x8xf32> to vector<1x8x8xf32>
    tpu.vector_store %arg2[%c0_54, %c0_55, %c24_56], %101 {strides = array<i32>} : memref<1x8x32xf32, #tpu.memory_space<vmem>>, vector<1x8x8xf32>,
    return
  }
  func.func @transform_0(%arg0: i32) -> (i32, i32, i32) {
    %c0_i32 = arith.constant 0 : i32
    %c0_i32_0 = arith.constant 0 : i32
    %c0_i32_1 = arith.constant 0 : i32
    return %arg0, %c0_i32, %c0_i32_0 : i32, i32, i32
  }
  func.func @transform_1(%arg0: i32) -> (i32, i32, i32) {
    %c0_i32 = arith.constant 0 : i32
    %c0_i32_0 = arith.constant 0 : i32
    %c0_i32_1 = arith.constant 0 : i32
    return %arg0, %c0_i32, %c0_i32_0 : i32, i32, i32
  }
}

module attributes {stable_mosaic.version = 11 : i64} {
  func.func @_matmul_kernel(%arg0: i32, %arg1: i32, %arg2: memref<16x32xf32, #tpu.memory_space<vmem>>, %arg3: memref<32x128xf32, #tpu.memory_space<vmem>>, %arg4: memref<1x128xf32, #tpu.memory_space<vmem>>, %arg5: memref<16x128xf32, #tpu.memory_space<vmem>>) attributes {dimension_semantics = [#tpu.dimension_semantics<parallel>, #tpu.dimension_semantics<parallel>], iteration_bounds = array<i64: 1, 1>, scalar_prefetch = 0 : i64, scratch_operands = 0 : i64, tpu.core_type = #tpu.core_type<tc>, window_params = [{transform_indices = @transform_0, window_bounds = array<i64: 16, 32>}, {transform_indices = @transform_1, window_bounds = array<i64: 32, 128>}, {transform_indices = @transform_2, window_bounds = array<i64: 1, 128>}, {transform_indices = @transform_3, window_bounds = array<i64: 16, 128>}]} {
    %c0 = arith.constant 0 : index
    %c0_0 = arith.constant 0 : index
    %0 = vector.load %arg2[%c0, %c0_0] : memref<16x32xf32, #tpu.memory_space<vmem>>, vector<16x32xf32>
    %c0_1 = arith.constant 0 : index
    %c0_2 = arith.constant 0 : index
    %1 = vector.load %arg3[%c0_1, %c0_2] : memref<32x128xf32, #tpu.memory_space<vmem>>, vector<32x128xf32>
    %cst = arith.constant dense<0.000000e+00> : vector<16x128xf32>
    %2 = tpu.matmul %0, %1, %cst {dimension_numbers = #tpu.dot_dimension_numbers<[1], [0], [0], [1], [0, 0, 1, 1], [], []>} : vector<16x32xf32>, vector<32x128xf32>, vector<16x128xf32> -> vector<16x128xf32>
    %c0_3 = arith.constant 0 : index
    %c0_4 = arith.constant 0 : index
    %3 = vector.load %arg4[%c0_3, %c0_4] : memref<1x128xf32, #tpu.memory_space<vmem>>, vector<1x128xf32>
    %4 = vector.broadcast %3 : vector<1x128xf32> to vector<16x128xf32>
    %5 = arith.addf %2, %4 : vector<16x128xf32>
    %cst_5 = arith.constant 1.702000e+00 : f32
    %6 = vector.broadcast %cst_5 : f32 to vector<16x128xf32>
    %7 = arith.mulf %6, %5 : vector<16x128xf32>
    %8 = arith.negf %7 : vector<16x128xf32>
    %9 = math.exp %8 : vector<16x128xf32>
    %cst_6 = arith.constant 1.000000e+00 : f32
    %10 = vector.broadcast %cst_6 : f32 to vector<16x128xf32>
    %11 = arith.addf %10, %9 : vector<16x128xf32>
    %12 = arith.divf %10, %11 : vector<16x128xf32>
    %13 = arith.mulf %5, %12 : vector<16x128xf32>
    %c0_7 = arith.constant 0 : index
    %c0_8 = arith.constant 0 : index
    %14 = vector.load %arg5[%c0_7, %c0_8] : memref<16x128xf32, #tpu.memory_space<vmem>>, vector<16x128xf32>
    tpu.vector_store %arg5[%c0_7, %c0_8], %13 {strides = array<i32>} : memref<16x128xf32, #tpu.memory_space<vmem>>, vector<16x128xf32>,
    return
  }
  func.func @transform_0(%arg0: i32, %arg1: i32) -> (i32, i32) {
    %c0_i32 = arith.constant 0 : i32
    %c0_i32_0 = arith.constant 0 : i32
    return %arg0, %c0_i32 : i32, i32
  }
  func.func @transform_1(%arg0: i32, %arg1: i32) -> (i32, i32) {
    %c0_i32 = arith.constant 0 : i32
    %c0_i32_0 = arith.constant 0 : i32
    return %c0_i32, %arg1 : i32, i32
  }
  func.func @transform_2(%arg0: i32, %arg1: i32) -> (i32, i32) {
    %c0_i32 = arith.constant 0 : i32
    %c0_i32_0 = arith.constant 0 : i32
    return %c0_i32, %arg1 : i32, i32
  }
  func.func @transform_3(%arg0: i32, %arg1: i32) -> (i32, i32) {
    %c0_i32 = arith.constant 0 : i32
    return %arg0, %arg1 : i32, i32
  }
}

module attributes {stable_mosaic.version = 11 : i64} {
  func.func @_matmul_kernel(%arg0: i32, %arg1: i32, %arg2: memref<16x128xf32, #tpu.memory_space<vmem>>, %arg3: memref<128x32xf32, #tpu.memory_space<vmem>>, %arg4: memref<1x32xf32, #tpu.memory_space<vmem>>, %arg5: memref<16x32xf32, #tpu.memory_space<vmem>>, %arg6: memref<1x32xf32, #tpu.memory_space<vmem>>, %arg7: memref<1x32xf32, #tpu.memory_space<vmem>>, %arg8: memref<16x32xf32, #tpu.memory_space<vmem>>, %arg9: memref<16x32xf32, #tpu.memory_space<vmem>>) attributes {dimension_semantics = [#tpu.dimension_semantics<parallel>, #tpu.dimension_semantics<parallel>], iteration_bounds = array<i64: 1, 1>, scalar_prefetch = 0 : i64, scratch_operands = 0 : i64, tpu.core_type = #tpu.core_type<tc>, window_params = [{transform_indices = @transform_0, window_bounds = array<i64: 16, 128>}, {transform_indices = @transform_1, window_bounds = array<i64: 128, 32>}, {transform_indices = @transform_2, window_bounds = array<i64: 1, 32>}, {transform_indices = @transform_3, window_bounds = array<i64: 16, 32>}, {transform_indices = @transform_4, window_bounds = array<i64: 1, 32>}, {transform_indices = @transform_5, window_bounds = array<i64: 1, 32>}, {transform_indices = @transform_6, window_bounds = array<i64: 16, 32>}, {transform_indices = @transform_7, window_bounds = array<i64: 16, 32>}]} {
    %c0 = arith.constant 0 : index
    %c0_0 = arith.constant 0 : index
    %0 = vector.load %arg2[%c0, %c0_0] : memref<16x128xf32, #tpu.memory_space<vmem>>, vector<16x128xf32>
    %c0_1 = arith.constant 0 : index
    %c0_2 = arith.constant 0 : index
    %1 = vector.load %arg3[%c0_1, %c0_2] : memref<128x32xf32, #tpu.memory_space<vmem>>, vector<128x32xf32>
    %cst = arith.constant dense<0.000000e+00> : vector<16x32xf32>
    %2 = tpu.matmul %0, %1, %cst {dimension_numbers = #tpu.dot_dimension_numbers<[1], [0], [0], [1], [0, 0, 1, 1], [], []>} : vector<16x128xf32>, vector<128x32xf32>, vector<16x32xf32> -> vector<16x32xf32>
    %c0_3 = arith.constant 0 : index
    %c0_4 = arith.constant 0 : index
    %3 = vector.load %arg4[%c0_3, %c0_4] : memref<1x32xf32, #tpu.memory_space<vmem>>, vector<1x32xf32>
    %4 = vector.broadcast %3 : vector<1x32xf32> to vector<16x32xf32>
    %5 = arith.addf %2, %4 : vector<16x32xf32>
    %c0_5 = arith.constant 0 : index
    %c0_6 = arith.constant 0 : index
    %6 = vector.load %arg5[%c0_5, %c0_6] : memref<16x32xf32, #tpu.memory_space<vmem>>, vector<16x32xf32>
    %7 = arith.addf %5, %6 : vector<16x32xf32>
    %c0_7 = arith.constant 0 : index
    %c0_8 = arith.constant 0 : index
    %8 = vector.load %arg8[%c0_7, %c0_8] : memref<16x32xf32, #tpu.memory_space<vmem>>, vector<16x32xf32>
    tpu.vector_store %arg8[%c0_7, %c0_8], %7 {strides = array<i32>} : memref<16x32xf32, #tpu.memory_space<vmem>>, vector<16x32xf32>,
    %cst_9 = arith.constant dense<0.000000e+00> : vector<16xf32>
    %9 = vector.multi_reduction <add>, %7, %cst_9 [1] : vector<16x32xf32> to vector<16xf32>
    %10 = vector.shape_cast %9 : vector<16xf32> to vector<16x1xf32>
    %cst_10 = arith.constant 3.200000e+01 : f32
    %11 = vector.broadcast %cst_10 : f32 to vector<16x1xf32>
    %12 = arith.divf %10, %11 : vector<16x1xf32>
    %13 = vector.broadcast %12 : vector<16x1xf32> to vector<16x32xf32>
    %14 = arith.subf %7, %13 : vector<16x32xf32>
    %15 = arith.mulf %14, %14 : vector<16x32xf32>
    %cst_11 = arith.constant dense<0.000000e+00> : vector<16xf32>
    %16 = vector.multi_reduction <add>, %15, %cst_11 [1] : vector<16x32xf32> to vector<16xf32>
    %17 = vector.shape_cast %16 : vector<16xf32> to vector<16x1xf32>
    %cst_12 = arith.constant 3.200000e+01 : f32
    %18 = vector.broadcast %cst_12 : f32 to vector<16x1xf32>
    %19 = arith.divf %17, %18 : vector<16x1xf32>
    %20 = vector.broadcast %12 : vector<16x1xf32> to vector<16x32xf32>
    %21 = arith.subf %7, %20 : vector<16x32xf32>
    %cst_13 = arith.constant 9.99999974E-6 : f32
    %22 = vector.broadcast %cst_13 : f32 to vector<16x1xf32>
    %23 = arith.addf %19, %22 : vector<16x1xf32>
    %24 = math.rsqrt %23 : vector<16x1xf32>
    %25 = vector.broadcast %24 : vector<16x1xf32> to vector<16x32xf32>
    %26 = arith.mulf %21, %25 : vector<16x32xf32>
    %c0_14 = arith.constant 0 : index
    %c0_15 = arith.constant 0 : index
    %27 = vector.load %arg6[%c0_14, %c0_15] : memref<1x32xf32, #tpu.memory_space<vmem>>, vector<1x32xf32>
    %28 = vector.broadcast %27 : vector<1x32xf32> to vector<16x32xf32>
    %29 = arith.mulf %26, %28 : vector<16x32xf32>
    %c0_16 = arith.constant 0 : index
    %c0_17 = arith.constant 0 : index
    %30 = vector.load %arg7[%c0_16, %c0_17] : memref<1x32xf32, #tpu.memory_space<vmem>>, vector<1x32xf32>
    %31 = vector.broadcast %30 : vector<1x32xf32> to vector<16x32xf32>
    %32 = arith.addf %29, %31 : vector<16x32xf32>
    %c0_18 = arith.constant 0 : index
    %c0_19 = arith.constant 0 : index
    %33 = vector.load %arg9[%c0_18, %c0_19] : memref<16x32xf32, #tpu.memory_space<vmem>>, vector<16x32xf32>
    tpu.vector_store %arg9[%c0_18, %c0_19], %32 {strides = array<i32>} : memref<16x32xf32, #tpu.memory_space<vmem>>, vector<16x32xf32>,
    return
  }
  func.func @transform_0(%arg0: i32, %arg1: i32) -> (i32, i32) {
    %c0_i32 = arith.constant 0 : i32
    %c0_i32_0 = arith.constant 0 : i32
    return %arg0, %c0_i32 : i32, i32
  }
  func.func @transform_1(%arg0: i32, %arg1: i32) -> (i32, i32) {
    %c0_i32 = arith.constant 0 : i32
    %c0_i32_0 = arith.constant 0 : i32
    return %c0_i32, %arg1 : i32, i32
  }
  func.func @transform_2(%arg0: i32, %arg1: i32) -> (i32, i32) {
    %c0_i32 = arith.constant 0 : i32
    %c0_i32_0 = arith.constant 0 : i32
    return %c0_i32, %arg1 : i32, i32
  }
  func.func @transform_3(%arg0: i32, %arg1: i32) -> (i32, i32) {
    %c0_i32 = arith.constant 0 : i32
    return %arg0, %arg1 : i32, i32
  }
  func.func @transform_4(%arg0: i32, %arg1: i32) -> (i32, i32) {
    %c0_i32 = arith.constant 0 : i32
    %c0_i32_0 = arith.constant 0 : i32
    return %c0_i32, %arg1 : i32, i32
  }
  func.func @transform_5(%arg0: i32, %arg1: i32) -> (i32, i32) {
    %c0_i32 = arith.constant 0 : i32
    %c0_i32_0 = arith.constant 0 : i32
    return %c0_i32, %arg1 : i32, i32
  }
  func.func @transform_6(%arg0: i32, %arg1: i32) -> (i32, i32) {
    %c0_i32 = arith.constant 0 : i32
    return %arg0, %arg1 : i32, i32
  }
  func.func @transform_7(%arg0: i32, %arg1: i32) -> (i32, i32) {
    %c0_i32 = arith.constant 0 : i32
    return %arg0, %arg1 : i32, i32
  }
}

module attributes {stable_mosaic.version = 11 : i64} {
  func.func @_matmul_kernel(%arg0: i32, %arg1: i32, %arg2: memref<16x128xf32, #tpu.memory_space<vmem>>, %arg3: memref<128x32xf32, #tpu.memory_space<vmem>>, %arg4: memref<1x32xf32, #tpu.memory_space<vmem>>, %arg5: memref<16x32xf32, #tpu.memory_space<vmem>>, %arg6: memref<1x32xf32, #tpu.memory_space<vmem>>, %arg7: memref<1x32xf32, #tpu.memory_space<vmem>>, %arg8: memref<16x32xf32, #tpu.memory_space<vmem>>, %arg9: memref<16x32xf32, #tpu.memory_space<vmem>>) attributes {dimension_semantics = [#tpu.dimension_semantics<parallel>, #tpu.dimension_semantics<parallel>], iteration_bounds = array<i64: 1, 1>, scalar_prefetch = 0 : i64, scratch_operands = 0 : i64, tpu.core_type = #tpu.core_type<tc>, window_params = [{transform_indices = @transform_0, window_bounds = array<i64: 16, 128>}, {transform_indices = @transform_1, window_bounds = array<i64: 128, 32>}, {transform_indices = @transform_2, window_bounds = array<i64: 1, 32>}, {transform_indices = @transform_3, window_bounds = array<i64: 16, 32>}, {transform_indices = @transform_4, window_bounds = array<i64: 1, 32>}, {transform_indices = @transform_5, window_bounds = array<i64: 1, 32>}, {transform_indices = @transform_6, window_bounds = array<i64: 16, 32>}, {transform_indices = @transform_7, window_bounds = array<i64: 16, 32>}]} {
    %c0 = arith.constant 0 : index
    %c0_0 = arith.constant 0 : index
    %0 = vector.load %arg2[%c0, %c0_0] : memref<16x128xf32, #tpu.memory_space<vmem>>, vector<16x128xf32>
    %c0_1 = arith.constant 0 : index
    %c0_2 = arith.constant 0 : index
    %1 = vector.load %arg3[%c0_1, %c0_2] : memref<128x32xf32, #tpu.memory_space<vmem>>, vector<128x32xf32>
    %cst = arith.constant dense<0.000000e+00> : vector<16x32xf32>
    %2 = tpu.matmul %0, %1, %cst {dimension_numbers = #tpu.dot_dimension_numbers<[1], [0], [0], [1], [0, 0, 1, 1], [], []>} : vector<16x128xf32>, vector<128x32xf32>, vector<16x32xf32> -> vector<16x32xf32>
    %c0_3 = arith.constant 0 : index
    %c0_4 = arith.constant 0 : index
    %3 = vector.load %arg4[%c0_3, %c0_4] : memref<1x32xf32, #tpu.memory_space<vmem>>, vector<1x32xf32>
    %4 = vector.broadcast %3 : vector<1x32xf32> to vector<16x32xf32>
    %5 = arith.addf %2, %4 : vector<16x32xf32>
    %c0_5 = arith.constant 0 : index
    %c0_6 = arith.constant 0 : index
    %6 = vector.load %arg5[%c0_5, %c0_6] : memref<16x32xf32, #tpu.memory_space<vmem>>, vector<16x32xf32>
    %7 = arith.addf %5, %6 : vector<16x32xf32>
    %c0_7 = arith.constant 0 : index
    %c0_8 = arith.constant 0 : index
    %8 = vector.load %arg8[%c0_7, %c0_8] : memref<16x32xf32, #tpu.memory_space<vmem>>, vector<16x32xf32>
    tpu.vector_store %arg8[%c0_7, %c0_8], %7 {strides = array<i32>} : memref<16x32xf32, #tpu.memory_space<vmem>>, vector<16x32xf32>,
    %cst_9 = arith.constant dense<0.000000e+00> : vector<16xf32>
    %9 = vector.multi_reduction <add>, %7, %cst_9 [1] : vector<16x32xf32> to vector<16xf32>
    %10 = vector.shape_cast %9 : vector<16xf32> to vector<16x1xf32>
    %cst_10 = arith.constant 3.200000e+01 : f32
    %11 = vector.broadcast %cst_10 : f32 to vector<16x1xf32>
    %12 = arith.divf %10, %11 : vector<16x1xf32>
    %13 = vector.broadcast %12 : vector<16x1xf32> to vector<16x32xf32>
    %14 = arith.subf %7, %13 : vector<16x32xf32>
    %15 = arith.mulf %14, %14 : vector<16x32xf32>
    %cst_11 = arith.constant dense<0.000000e+00> : vector<16xf32>
    %16 = vector.multi_reduction <add>, %15, %cst_11 [1] : vector<16x32xf32> to vector<16xf32>
    %17 = vector.shape_cast %16 : vector<16xf32> to vector<16x1xf32>
    %cst_12 = arith.constant 3.200000e+01 : f32
    %18 = vector.broadcast %cst_12 : f32 to vector<16x1xf32>
    %19 = arith.divf %17, %18 : vector<16x1xf32>
    %20 = vector.broadcast %12 : vector<16x1xf32> to vector<16x32xf32>
    %21 = arith.subf %7, %20 : vector<16x32xf32>
    %cst_13 = arith.constant 9.99999974E-6 : f32
    %22 = vector.broadcast %cst_13 : f32 to vector<16x1xf32>
    %23 = arith.addf %19, %22 : vector<16x1xf32>
    %24 = math.rsqrt %23 : vector<16x1xf32>
    %25 = vector.broadcast %24 : vector<16x1xf32> to vector<16x32xf32>
    %26 = arith.mulf %21, %25 : vector<16x32xf32>
    %c0_14 = arith.constant 0 : index
    %c0_15 = arith.constant 0 : index
    %27 = vector.load %arg6[%c0_14, %c0_15] : memref<1x32xf32, #tpu.memory_space<vmem>>, vector<1x32xf32>
    %28 = vector.broadcast %27 : vector<1x32xf32> to vector<16x32xf32>
    %29 = arith.mulf %26, %28 : vector<16x32xf32>
    %c0_16 = arith.constant 0 : index
    %c0_17 = arith.constant 0 : index
    %30 = vector.load %arg7[%c0_16, %c0_17] : memref<1x32xf32, #tpu.memory_space<vmem>>, vector<1x32xf32>
    %31 = vector.broadcast %30 : vector<1x32xf32> to vector<16x32xf32>
    %32 = arith.addf %29, %31 : vector<16x32xf32>
    %c0_18 = arith.constant 0 : index
    %c0_19 = arith.constant 0 : index
    %33 = vector.load %arg9[%c0_18, %c0_19] : memref<16x32xf32, #tpu.memory_space<vmem>>, vector<16x32xf32>
    tpu.vector_store %arg9[%c0_18, %c0_19], %32 {strides = array<i32>} : memref<16x32xf32, #tpu.memory_space<vmem>>, vector<16x32xf32>,
    return
  }
  func.func @transform_0(%arg0: i32, %arg1: i32) -> (i32, i32) {
    %c0_i32 = arith.constant 0 : i32
    %c0_i32_0 = arith.constant 0 : i32
    return %arg0, %c0_i32 : i32, i32
  }
  func.func @transform_1(%arg0: i32, %arg1: i32) -> (i32, i32) {
    %c0_i32 = arith.constant 0 : i32
    %c0_i32_0 = arith.constant 0 : i32
    return %c0_i32, %arg1 : i32, i32
  }
  func.func @transform_2(%arg0: i32, %arg1: i32) -> (i32, i32) {
    %c0_i32 = arith.constant 0 : i32
    %c0_i32_0 = arith.constant 0 : i32
    return %c0_i32, %arg1 : i32, i32
  }
  func.func @transform_3(%arg0: i32, %arg1: i32) -> (i32, i32) {
    %c0_i32 = arith.constant 0 : i32
    return %arg0, %arg1 : i32, i32
  }
  func.func @transform_4(%arg0: i32, %arg1: i32) -> (i32, i32) {
    %c0_i32 = arith.constant 0 : i32
    %c0_i32_0 = arith.constant 0 : i32
    return %c0_i32, %arg1 : i32, i32
  }
  func.func @transform_5(%arg0: i32, %arg1: i32) -> (i32, i32) {
    %c0_i32 = arith.constant 0 : i32
    %c0_i32_0 = arith.constant 0 : i32
    return %c0_i32, %arg1 : i32, i32
  }
  func.func @transform_6(%arg0: i32, %arg1: i32) -> (i32, i32) {
    %c0_i32 = arith.constant 0 : i32
    return %arg0, %arg1 : i32, i32
  }
  func.func @transform_7(%arg0: i32, %arg1: i32) -> (i32, i32) {
    %c0_i32 = arith.constant 0 : i32
    return %arg0, %arg1 : i32, i32
  }
}

module attributes {stable_mosaic.version = 11 : i64} {
  func.func @_matmul_kernel(%arg0: i32, %arg1: i32, %arg2: memref<2x32xf32, #tpu.memory_space<vmem>>, %arg3: memref<32x32xf32, #tpu.memory_space<vmem>>, %arg4: memref<2x32xf32, #tpu.memory_space<vmem>>) attributes {dimension_semantics = [#tpu.dimension_semantics<parallel>, #tpu.dimension_semantics<parallel>], iteration_bounds = array<i64: 1, 1>, scalar_prefetch = 0 : i64, scratch_operands = 0 : i64, tpu.core_type = #tpu.core_type<tc>, window_params = [{transform_indices = @transform_0, window_bounds = array<i64: 2, 32>}, {transform_indices = @transform_1, window_bounds = array<i64: 32, 32>}, {transform_indices = @transform_2, window_bounds = array<i64: 2, 32>}]} {
    %c0 = arith.constant 0 : index
    %c0_0 = arith.constant 0 : index
    %0 = vector.load %arg2[%c0, %c0_0] : memref<2x32xf32, #tpu.memory_space<vmem>>, vector<2x32xf32>
    %c0_1 = arith.constant 0 : index
    %c0_2 = arith.constant 0 : index
    %1 = vector.load %arg3[%c0_1, %c0_2] : memref<32x32xf32, #tpu.memory_space<vmem>>, vector<32x32xf32>
    %cst = arith.constant dense<0.000000e+00> : vector<2x32xf32>
    %2 = tpu.matmul %0, %1, %cst {dimension_numbers = #tpu.dot_dimension_numbers<[1], [0], [0], [1], [0, 0, 1, 1], [], []>} : vector<2x32xf32>, vector<32x32xf32>, vector<2x32xf32> -> vector<2x32xf32>
    %c0_3 = arith.constant 0 : index
    %c0_4 = arith.constant 0 : index
    %3 = vector.load %arg4[%c0_3, %c0_4] : memref<2x32xf32, #tpu.memory_space<vmem>>, vector<2x32xf32>
    tpu.vector_store %arg4[%c0_3, %c0_4], %2 {strides = array<i32>} : memref<2x32xf32, #tpu.memory_space<vmem>>, vector<2x32xf32>,
    return
  }
  func.func @transform_0(%arg0: i32, %arg1: i32) -> (i32, i32) {
    %c0_i32 = arith.constant 0 : i32
    %c0_i32_0 = arith.constant 0 : i32
    return %arg0, %c0_i32 : i32, i32
  }
  func.func @transform_1(%arg0: i32, %arg1: i32) -> (i32, i32) {
    %c0_i32 = arith.constant 0 : i32
    %c0_i32_0 = arith.constant 0 : i32
    return %c0_i32, %arg1 : i32, i32
  }
  func.func @transform_2(%arg0: i32, %arg1: i32) -> (i32, i32) {
    %c0_i32 = arith.constant 0 : i32
    return %arg0, %arg1 : i32, i32
  }
}

</mosaic_0001>

<bundles_post_ra>
// kernel: text_encoder_forward.13
= control target key start
LH: loop header
LB: loop body
LE: loop exit
PB: predicated region body
PF: predicated region fallthrough
CT: control target
= control target key end

     0   :  { %vm27_vm0 = vcmask 261120   ;;  %vm109_vm1 = vcmask 785408   ;;  %s191_s1 = inlined_call_operand.vmem [shape: f32[32,96], index: 1, kind: input, shape index: {}]   ;;  %s192_s0 = inlined_call_operand.vmem [shape: f32[16,32], index: 0, kind: input, shape index: {}]   ;;  %s193_s2 = inlined_call_operand.vmem [shape: f32[1,96], index: 2, kind: input, shape index: {}]   ;;  %s194_s3 = inlined_call_operand.vmem [shape: f32[16,96], index: 3, kind: output, shape index: {}]  }
   0x1   :  { %v16_v0 = vld [vmem:[%s191_s1] sm:$0xff]  ;;  %v17_v1 = vld [vmem:[%s191_s1 + $0x8] sm:$0xff]  ;;  %v18_v2 = vld [vmem:[%s191_s1 + $0x10] sm:$0xff] }
   0x2   :  { %v136_v3 = vpack.c.bf16 %v17_v1, %v16_v0  ;;  %v19_v4 = vld [vmem:[%s191_s1 + $0x18] sm:$0xff]  ;;  %v14_v5 = vld [vmem:[%s192_s0] sm:$0xff]  ;;  %v15_v7 = vld [vmem:[%s192_s0 + $0x8] sm:$0xff] }
   0x3   :  { %v140_v6 = vpack.c.bf16 %v19_v4, %v18_v2  ;;  %133 = vmatprep.mubr.msk.f32.mxu0 %vm27_vm0, %v14_v5  ;;  %v116_v8 = vld [vmem:[%s193_s2] ss:$0 sm:$0xff] }
   0x4   :  { %137 = vmatprep.subr.bf16.mxu0 %v136_v3 }
   0x5   :  { %139 = vmatpush3.bf16.msra.mxu0 %v136_v3 }
   0x6   :  { %141 = vmatprep.subr.bf16.mxu0 %v140_v6 }
   0x9   :  { %143 = vmatpush3.bf16.msra.mxu0 %v140_v6 }
   0xc   :  { %134 = vmatmul.mubr.msk.f32.vlgmr.msra.gmra.mrb[0].mxu0 %vm27_vm0, %v15_v7 }
  0xdf   :  { %v135_v9 = vpop.f32.mrb[0].mxu0 }
  0xe0   :  { %v106_v10 = vadd.f32 %v135_v9, %v116_v8  ;;  %v100_v11 = vpop.f32.mrb[1].mxu0 }
  0xe1   :  { %v101_v12 = vadd.f32 %v116_v8, %v100_v11 }
  0xe2   :  { %111 = vst.msk [vmem:[%s194_s3 + $0x8] sm:$0xff] %vm109_vm1, %v106_v10 }
  0xe3   :  { %110 = vst.msk [vmem:[%s194_s3] sm:$0xff] %vm109_vm1, %v101_v12 }

// kernel: text_encoder_forward.12
= control target key start
LH: loop header
LB: loop body
LE: loop exit
PB: predicated region body
PF: predicated region fallthrough
CT: control target
= control target key end

     0   :  { %vm16_vm0 = vcmask 261120   ;;  %s118_s0 = inlined_call_operand.vmem [shape: f32[16,32], index: 0, kind: input, shape index: {}]   ;;  %s119_s1 = inlined_call_operand.vmem [shape: f32[1,32], index: 1, kind: input, shape index: {}]   ;;  %s120_s2 = inlined_call_operand.vmem [shape: f32[1,32], index: 2, kind: input, shape index: {}]   ;;  %s121_s3 = inlined_call_operand.vmem [shape: f32[16,32], index: 3, kind: output, shape index: {}]  }
   0x1   :  { %v14_v0 = vld [vmem:[%s118_s0] sm:$0xff]  ;;  %v15_v1 = vld [vmem:[%s118_s0 + $0x8] sm:$0xff] }
   0x2   :  { %v17_v2 = vsel %vm16_vm0, %v14_v0, 0.0  ;;  %v20_v3 = vsel %vm16_vm0, %v15_v1, 0.0  ;;  %v68_v21 = vld [vmem:[%s119_s1] ss:$0 sm:$0xff] }
   0x3   :  { %18 = vadd.xlane.f32.xlu0 %v17_v2  ;;  %v69_v23 = vld [vmem:[%s120_s2] ss:$0 sm:$0xff] }
   0x7   :  { %21 = vadd.xlane.f32.xlu0 %v20_v3 }
  0x90   :  { %v19_v4 = vpop.xlane.xlu0 %18 }
  0x91   :  { %v24_v5 = vmul.f32 0.03125, %v19_v4 }
  0x93   :  { %v26_v6 = vsub.f32 %v14_v0, %v24_v5 }
  0x94   :  { %v22_v7 = vpop.xlane.xlu0 %21 }
  0x95   :  { %v25_v8 = vmul.f32 0.03125, %v22_v7  ;;  %v28_v9 = vmul.f32 %v26_v6, %v26_v6 }
  0x97   :  { %v27_v10 = vsub.f32 %v15_v1, %v25_v8  ;;  %v30_v11 = vsel %vm16_vm0, %v28_v9, 0.0 }
  0x98   :  { %31 = vadd.xlane.f32.xlu1 %v30_v11 }
  0x99   :  { %v29_v12 = vmul.f32 %v27_v10, %v27_v10 }
  0x9b   :  { %v33_v13 = vsel %vm16_vm0, %v29_v12, 0.0 }
  0x9c   :  { %34 = vadd.xlane.f32.xlu1 %v33_v13 }
 0x125   :  { %v32_v14 = vpop.xlane.xlu1 %31 }
 0x126   :  { %v36_v15 = vmul.f32 0.03125, %v32_v14 }
 0x128   :  { %v38_v16 = vadd.f32 1e-05, %v36_v15 }
 0x129   :  { %v35_v17 = vpop.xlane.xlu1 %34 }
 0x12a   :  { %70 = vrsqrt.f32 %v38_v16  ;;  %v37_v18 = vmul.f32 0.03125, %v35_v17 }
 0x12c   :  { %v39_v19 = vadd.f32 1e-05, %v37_v18 }
 0x12e   :  { %72 = vrsqrt.f32 %v39_v19 }
 0x134   :  { %v71_v20 = vpop.eup %70 }
 0x135   :  { %v42_v22 = vmul.f32 %v71_v20, %v26_v6 }
 0x137   :  { %v51_v24 = vmul.f32 %v68_v21, %v42_v22 }
 0x138   :  { %v73_v25 = vpop.eup %72 }
 0x139   :  { %v60_v26 = vadd.f32 %v69_v23, %v51_v24  ;;  %v43_v27 = vmul.f32 %v73_v25, %v27_v10 }
 0x13b   :  { %62 = vst.msk [vmem:[%s121_s3] sm:$0xff] %vm16_vm0, %v60_v26  ;;  %v52_v28 = vmul.f32 %v68_v21, %v43_v27 }
 0x13d   :  { %v61_v29 = vadd.f32 %v69_v23, %v52_v28 }
 0x13f   :  { %63 = vst.msk [vmem:[%s121_s3 + $0x8] sm:$0xff] %vm16_vm0, %v61_v29 }

// kernel: text_encoder_forward.15
= control target key start
LH: loop header
LB: loop body
LE: loop exit
PB: predicated region body
PF: predicated region fallthrough
CT: control target
= control target key end

     0   :  { %vm38_vm0 = vcmask 261120   ;;  %s310_s1 = inlined_call_operand.vmem [shape: f32[32,32], index: 1, kind: input, shape index: {}]   ;;  %s311_s0 = inlined_call_operand.vmem [shape: f32[16,32], index: 0, kind: input, shape index: {}]   ;;  %s312_s2 = inlined_call_operand.vmem [shape: f32[1,32], index: 2, kind: input, shape index: {}]   ;;  %s313_s3 = inlined_call_operand.vmem [shape: f32[16,32], index: 3, kind: input, shape index: {}]   ;;  %s314_s6 = inlined_call_operand.vmem [shape: f32[16,32], index: 6, kind: output, shape index: {0}]   ;;  %s315_s4 = inlined_call_operand.vmem [shape: f32[1,32], index: 4, kind: input, shape index: {}]   ;;  %s316_s5 = inlined_call_operand.vmem [shape: f32[1,32], index: 5, kind: input, shape index: {}]   ;;  %s317_s7 = inlined_call_operand.vmem [shape: f32[16,32], index: 7, kind: output, shape index: {1}]  }
   0x1   :  { %v27_v0 = vld [vmem:[%s310_s1] sm:$0xff]  ;;  %v28_v1 = vld [vmem:[%s310_s1 + $0x8] sm:$0xff]  ;;  %v29_v2 = vld [vmem:[%s310_s1 + $0x10] sm:$0xff] }
   0x2   :  { %v203_v3 = vpack.c.bf16 %v28_v1, %v27_v0  ;;  %v30_v4 = vld [vmem:[%s310_s1 + $0x18] sm:$0xff]  ;;  %v25_v5 = vld [vmem:[%s311_s0] sm:$0xff]  ;;  %v26_v7 = vld [vmem:[%s311_s0 + $0x8] sm:$0xff] }
   0x3   :  { %v207_v6 = vpack.c.bf16 %v30_v4, %v29_v2  ;;  %200 = vmatprep.mubr.msk.f32.mxu0 %vm38_vm0, %v25_v5  ;;  %v181_v8 = vld [vmem:[%s312_s2] ss:$0 sm:$0xff]  ;;  %v121_v10 = vld [vmem:[%s313_s3 + $0x8] sm:$0xff] }
   0x4   :  { %204 = vmatprep.subr.bf16.mxu0 %v203_v3  ;;  %v120_v13 = vld [vmem:[%s313_s3] sm:$0xff] }
   0x5   :  { %206 = vmatpush3.bf16.msra.mxu0 %v203_v3  ;;  %v184_v36 = vld [vmem:[%s315_s4] ss:$0 sm:$0xff] }
   0x6   :  { %208 = vmatprep.subr.bf16.mxu0 %v207_v6  ;;  %v185_v38 = vld [vmem:[%s316_s5] ss:$0 sm:$0xff] }
   0x9   :  { %210 = vmatpush3.bf16.msra.mxu0 %v207_v6 }
   0xc   :  { %201 = vmatmul.mubr.msk.f32.vlgmr.msra.gmra.mrb[0].mxu0 %vm38_vm0, %v26_v7 }
  0xdf   :  { %v202_v9 = vpop.f32.mrb[0].mxu0 }
  0xe0   :  { %v117_v11 = vadd.f32 %v202_v9, %v181_v8  ;;  %v111_v12 = vpop.f32.mrb[1].mxu0 }
  0xe1   :  { %v112_v14 = vadd.f32 %v181_v8, %v111_v12 }
  0xe2   :  { %v123_v15 = vadd.f32 %v121_v10, %v117_v11 }
  0xe3   :  { %v122_v16 = vadd.f32 %v120_v13, %v112_v14 }
  0xe4   :  { %125 = vst.msk [vmem:[%s314_s6 + $0x8] sm:$0xff] %vm38_vm0, %v123_v15  ;;  %v129_v18 = vsel %vm38_vm0, %v123_v15, 0.0 }
  0xe5   :  { %124 = vst.msk [vmem:[%s314_s6] sm:$0xff] %vm38_vm0, %v122_v16  ;;  %v126_v17 = vsel %vm38_vm0, %v122_v16, 0.0 }
  0xe6   :  { %127 = vadd.xlane.f32.xlu0 %v126_v17 }
  0xea   :  { %130 = vadd.xlane.f32.xlu0 %v129_v18 }
 0x173   :  { %v128_v19 = vpop.xlane.xlu0 %127 }
 0x174   :  { %v133_v20 = vmul.f32 0.03125, %v128_v19 }
 0x176   :  { %v135_v21 = vsub.f32 %v122_v16, %v133_v20 }
 0x177   :  { %v131_v22 = vpop.xlane.xlu0 %130 }
 0x178   :  { %v134_v23 = vmul.f32 0.03125, %v131_v22  ;;  %v137_v24 = vmul.f32 %v135_v21, %v135_v21 }
 0x17a   :  { %v136_v25 = vsub.f32 %v123_v15, %v134_v23  ;;  %v139_v26 = vsel %vm38_vm0, %v137_v24, 0.0 }
 0x17b   :  { %140 = vadd.xlane.f32.xlu1 %v139_v26 }
 0x17c   :  { %v138_v27 = vmul.f32 %v136_v25, %v136_v25 }
 0x17e   :  { %v142_v28 = vsel %vm38_vm0, %v138_v27, 0.0 }
 0x17f   :  { %143 = vadd.xlane.f32.xlu1 %v142_v28 }
 0x208   :  { %v141_v29 = vpop.xlane.xlu1 %140 }
 0x209   :  { %v145_v30 = vmul.f32 0.03125, %v141_v29 }
 0x20b   :  { %v147_v31 = vadd.f32 1e-05, %v145_v30 }
 0x20c   :  { %v144_v32 = vpop.xlane.xlu1 %143 }
 0x20d   :  { %211 = vrsqrt.f32 %v147_v31  ;;  %v146_v33 = vmul.f32 0.03125, %v144_v32 }
 0x20f   :  { %v148_v34 = vadd.f32 1e-05, %v146_v33 }
 0x211   :  { %213 = vrsqrt.f32 %v148_v34 }
 0x217   :  { %v212_v35 = vpop.eup %211 }
 0x218   :  { %v151_v37 = vmul.f32 %v212_v35, %v135_v21 }
 0x21a   :  { %v160_v39 = vmul.f32 %v184_v36, %v151_v37 }
 0x21b   :  { %v214_v40 = vpop.eup %213 }
 0x21c   :  { %v169_v41 = vadd.f32 %v185_v38, %v160_v39  ;;  %v152_v42 = vmul.f32 %v214_v40, %v136_v25 }
 0x21e   :  { %171 = vst.msk [vmem:[%s317_s7] sm:$0xff] %vm38_vm0, %v169_v41  ;;  %v161_v43 = vmul.f32 %v184_v36, %v152_v42 }
 0x220   :  { %v170_v44 = vadd.f32 %v185_v38, %v161_v43 }
 0x222   :  { %172 = vst.msk [vmem:[%s317_s7 + $0x8] sm:$0xff] %vm38_vm0, %v170_v44 }

// kernel: text_encoder_forward.14
= control target key start
LH: loop header
LB: loop body
LE: loop exit
PB: predicated region body
PF: predicated region fallthrough
CT: control target
= control target key end

     0   :  { %s1018_s6 = smov 0   ;;  %s1104_s0 = inlined_call_operand.vmem [shape: f32[2,8,96], index: 0, kind: input, shape index: {}]   ;;  %s1105_s1 = inlined_call_operand.vmem [shape: f32[2,8,32], index: 1, kind: output, shape index: {}]  }
   0x1 LB: > { %s865_s7 = sadd.s32 4294967295, %s989_s6   ;;  %p869_p0 = scmp.ge.s32.totalorder %s989_s6, 1  ;;  %s989_s6 = sphi %s1018_s6, %s11_s6  }
   0x2   : > { %p86_p1 = scmp.lt.s32.totalorder %s989_s6, 3 }
   0x4   : > { %p87_p2 = pnand %p869_p0, %p86_p1 }
   0x5   : > { %p104_p3 = scmp.lt.s32.totalorder (!%p87_p2), %s865_s7, 1  ;;  %v991_v0 = vmov (!%p87_p2), 0.0   ;;  %vm992_vm0 = vmmov (!%p87_p2), 0   ;;  %s993_s12 = smov (!%p87_p2), 96   ;;  %vm123_vm1 = vcmask (!%p87_p2), 64512   ;;  %v112_v4 = vlaneseq (!%p87_p2) }
   0x6   : > { %90 = sbr.rel (%p87_p2) target bundleno = 1531 (0x5fb), region = 24  ;;  %902 = vmatprep.subr.mxu0 (!%p87_p2), %v991_v0  ;;  %904 = vmatprep.mubr.msk.f32.mxu0 (!%p87_p2), %vm992_vm0, %v991_v0  ;;  %s994_s13 = smov (!%p87_p2), 64   ;;  %v998_v7 = vmov (!%p87_p2), -1e+30   ;;  %vm460_vm3 = vcmask (!%p87_p2), 130112   ;;  %vm635_vm4 = vcmask (!%p87_p2), 195712  }
   0x7   : > { %907 = vmatprep.subr.mxu1 (!%p87_p2), %v991_v0  ;;  %909 = vmatprep.mubr.msk.f32.mxu1 (!%p87_p2), %vm992_vm0, %v991_v0  ;;  %s995_s14 = smov (!%p87_p2), 88   ;;  %s996_s15 = smov (!%p87_p2), 120   ;;  %v113_v5 = vshrl.u32 (!%p87_p2), %v112_v4, 7  ;;  %v115_v6 = vand.u32 (!%p87_p2), 127, %v112_v4  ;;  %vm810_vm5 = vcmask (!%p87_p2), 261312  }
   0x8   : > { %s997_s16 = smov (!%p87_p2), 80   ;;  %s999_s17 = smov (!%p87_p2), 72  }
   0x9   : > { %vm116_vm2 = vcmp.le.s32.totalorder (!%p87_p2), %v115_v6, %v113_v5  ;;  %s1000_s18 = smov (!%p87_p2), 112   ;;  %s1001_s19 = smov (!%p87_p2), 104  }
   0xa   : > { %v117_v8 = vsel (!%p87_p2), %vm116_vm2, 0.0, %v998_v7  ;;  %s1002_s23 = smov (!%p87_p2), 56   ;;  %s1003_s24 = smov (!%p87_p2), 40  }
   0xb   : > { %s1004_s25 = smov (!%p87_p2), 48   ;;  %s1005_s26 = smov (!%p87_p2), 8  }
   0xc   : > { %s1006_s27 = smov (!%p87_p2), 16   ;;  %s1007_s28 = smov (!%p87_p2), 24  }
   0xd   : > { %s1107_s7 = smov (!%p104_p3, %s865_s7), 1 }
   0xe   : > { %s870_s8 = sshll.u32 %s1107_s7, 3 }
   0xf   : > { %s107_s11 = scalar_lea.vmem %s1104_s0, %s870_s8  ;;  %s1076_s22 = scalar_lea.vmem %s1105_s1, %s870_s8 }
  0x10   : > { %v1040_v1 = vld [vmem:[%s107_s11] sm:$0xff] }
  0x11   : > { %121 = vrot.lane.b32.xlu0 %v1040_v1, %s993_s12  ;;  %v119_v2 = vmul.f32 0.35355338, %v1040_v1  ;;  %210 = vrot.lane.b32.xlu1 %v1040_v1, %s994_s13 }
  0x15   : > { %293 = vrot.lane.b32.xlu1 %v1040_v1, %s995_s14 }
  0x19   : > { %290 = vrot.lane.b32.xlu1 %v119_v2, %s996_s15 }
  0x1d   : > { %468 = vrot.lane.b32.xlu1 %v1040_v1, %s997_s16 }
  0x83   : > { %v122_v3 = vpop.permute.xlu0 %121  ;;  %v211_v13 = vpop.permute.xlu1 %210 }
  0x84   : > { %903 = vmatpush3.xpose.msk.msra.mxu0 %vm123_vm1, %v122_v3  ;;  %908 = vmatpush3.msra.mxu1 %v211_v13 }
  0x85   : > { %917 = vmatprep.subr.mxu0 %v991_v0  ;;  %912 = vmatprep.subr.mxu1 %v991_v0 }
  0x87   : > { %905 = vmatmul.mubr.msk.f32.vlgmr.msra.gmra.mrb[0].mxu0 %vm123_vm1, %v119_v2  ;;  %v294_v19 = vpop.permute.xlu1 %293 }
  0x88   : > { %919 = vmatprep.mubr.msk.f32.mxu0 %vm992_vm0, %v991_v0 }
  0x8b   : > { %v291_v20 = vpop.permute.xlu1 %290 }
  0x8f   : > { %v469_v21 = vpop.permute.xlu1 %468 }
 0x15a   : > { %v195_v9 = vpop.f32.mrb[0].mxu0 }
 0x15b   : > { %v196_v10 = vadd.f32 %v195_v9, %v117_v8  ;;  %v906_v11 = vpop.f32.mrb[1].mxu0 }
 0x15d   : > { %v199_v12 = vsel %vm123_vm1, %v196_v10, -inf }
 0x15e   : > { %200 = vmax.xlane.f32.xlu0 %v199_v12 }
 0x174   : > { %643 = vrot.lane.b32.xlu0 %v1040_v1, %s999_s17 }
 0x1eb   : > { %v201_v14 = vpop.xlane.xlu0 %200 }
 0x1ec   : > { %v202_v15 = vsub.f32 %v196_v10, %v201_v14 }
 0x1ee   : > { %v203_v16 = vmul.f32 1.442695, %v202_v15 }
 0x1ef   : > { %v644_v26 = vpop.permute.xlu0 %643 }
 0x1f0   : > { %967 = vpow2.f32 %v203_v16 }
 0x1fa   : > { %v968_v17 = vpop.eup %967 }
 0x1fb   : > { %v205_v18 = vsel %vm123_vm1, %v968_v17, 0.0 }
 0x1fc   : > { %206 = vadd.xlane.f32.xlu1 %v205_v18 }
 0x20d   : > { %465 = vrot.lane.b32.xlu1 %v119_v2, %s1000_s18 }
 0x211   : > { %640 = vrot.lane.b32.xlu1 %v119_v2, %s1001_s19 }
 0x289   : > { %v207_v22 = vpop.xlane.xlu1 %206 }
 0x28a   : > { %969 = vrcp.f32 %v207_v22 }
 0x28d   : > { %v466_v25 = vpop.permute.xlu1 %465 }
 0x291   : > { %v641_v27 = vpop.permute.xlu1 %640 }
 0x294   : > { %v970_v23 = vpop.eup %969 }
 0x295   : > { %v209_v24 = vmul.f32 %v970_v23, %v968_v17 }
 0x297   : > { %910 = vmatmul.mubr.msk.f32.vlgmr.msra.gmra.mrb[0].mxu1 %vm123_vm1, %v209_v24 }
 0x298   : > { %913 = vmatpush3.xpose.msk.msra.mxu1 %vm123_vm1, %v294_v19  ;;  %914 = vmatprep.mubr.msk.f32.mxu1 %vm992_vm0, %v991_v0 }
 0x299   : > { %922 = vmatprep.subr.mxu1 %v991_v0 }
 0x29b   : > { %915 = vmatmul.mubr.msk.f32.vlgmr.msra.gmra.mrb[2].mxu1 %vm123_vm1, %v291_v20 }
 0x29c   : > { %923 = vmatpush3.xpose.msk.msra.mxu1 %vm123_vm1, %v469_v21  ;;  %924 = vmatprep.mubr.msk.f32.mxu1 %vm992_vm0, %v991_v0 }
 0x29d   : > { %932 = vmatprep.subr.mxu1 %v991_v0 }
 0x29f   : > { %925 = vmatmul.mubr.msk.f32.vlgmr.msra.gmra.mrb[4].mxu1 %vm123_vm1, %v466_v25 }
 0x2a0   : > { %933 = vmatpush3.xpose.msk.msra.mxu1 %vm123_vm1, %v644_v26  ;;  %934 = vmatprep.mubr.msk.f32.mxu1 %vm992_vm0, %v991_v0 }
 0x2a3   : > { %935 = vmatmul.mubr.msk.f32.vlgmr.msra.gmra.mrb[6].mxu1 %vm123_vm1, %v641_v27 }
 0x36a   : > { %v282_v28 = vpop.f32.mrb[0].mxu1 }
 0x36b   : > { %286 = vst.msk [vmem:[%s1076_s22] sm:$0xff] %vm123_vm1, %v282_v28  ;;  %v911_v29 = vpop.f32.mrb[1].mxu1 }
 0x36e   : > { %v365_v30 = vpop.f32.mrb[2].mxu1 }
 0x36f   : > { %v366_v31 = vadd.f32 %v365_v30, %v117_v8  ;;  %v916_v32 = vpop.f32.mrb[3].mxu1 }
 0x371   : > { %v369_v33 = vsel %vm123_vm1, %v366_v31, -inf }
 0x372   : > { %370 = vmax.xlane.f32.xlu1 %v369_v33  ;;  %v540_v34 = vpop.f32.mrb[4].mxu1 }
 0x373   : > { %v541_v35 = vadd.f32 %v540_v34, %v117_v8  ;;  %v926_v36 = vpop.f32.mrb[5].mxu1 }
 0x375   : > { %v544_v37 = vsel %vm123_vm1, %v541_v35, -inf }
 0x376   : > { %545 = vmax.xlane.f32.xlu0 %v544_v37  ;;  %v715_v38 = vpop.f32.mrb[6].mxu1 }
 0x377   : > { %v716_v39 = vadd.f32 %v715_v38, %v117_v8  ;;  %v936_v40 = vpop.f32.mrb[7].mxu1 }
 0x379   : > { %v719_v41 = vsel %vm123_vm1, %v716_v39, -inf }
 0x37a   : > { %720 = vmax.xlane.f32.xlu1 %v719_v41 }
 0x38b   : > { %380 = vrot.lane.b32.xlu1 %v1040_v1, %s1002_s23 }
 0x3ff   : > { %v371_v42 = vpop.xlane.xlu1 %370 }
 0x400   : > { %v372_v43 = vsub.f32 %v366_v31, %v371_v42 }
 0x402   : > { %v373_v44 = vmul.f32 1.442695, %v372_v43 }
 0x403   : > { %v546_v45 = vpop.xlane.xlu0 %545 }
 0x404   : > { %971 = vpow2.f32 %v373_v44  ;;  %v547_v46 = vsub.f32 %v541_v35, %v546_v45 }
 0x406   : > { %v548_v47 = vmul.f32 1.442695, %v547_v46 }
 0x407   : > { %v721_v48 = vpop.xlane.xlu1 %720 }
 0x408   : > { %973 = vpow2.f32 %v548_v47  ;;  %v722_v49 = vsub.f32 %v716_v39, %v721_v48 }
 0x40a   : > { %v723_v50 = vmul.f32 1.442695, %v722_v49 }
 0x40b   : > { %v381_v51 = vpop.permute.xlu1 %380 }
 0x40c   : > { %975 = vpow2.f32 %v723_v50  ;;  %918 = vmatpush3.msra.mxu0 %v381_v51 }
 0x40d   : > { %927 = vmatprep.subr.mxu0 %v991_v0 }
 0x40e   : > { %v972_v52 = vpop.eup %971 }
 0x40f   : > { %v375_v53 = vsel %vm123_vm1, %v972_v52, 0.0 }
 0x410   : > { %376 = vadd.xlane.f32.xlu1 %v375_v53 }
 0x412   : > { %v974_v54 = vpop.eup %973 }
 0x413   : > { %v550_v55 = vsel %vm123_vm1, %v974_v54, 0.0 }
 0x414   : > { %551 = vadd.xlane.f32.xlu1 %v550_v55 }
 0x416   : > { %v976_v56 = vpop.eup %975 }
 0x417   : > { %v725_v57 = vsel %vm123_vm1, %v976_v56, 0.0 }
 0x418   : > { %726 = vadd.xlane.f32.xlu0 %v725_v57 }
 0x425   : > { %730 = vrot.lane.b32.xlu1 %v1040_v1, %s1003_s24 }
 0x42e   : > { %555 = vrot.lane.b32.xlu0 %v1040_v1, %s1004_s25 }
 0x49d   : > { %v377_v58 = vpop.xlane.xlu1 %376 }
 0x49e   : > { %977 = vrcp.f32 %v377_v58 }
 0x4a1   : > { %v552_v59 = vpop.xlane.xlu1 %551 }
 0x4a2   : > { %979 = vrcp.f32 %v552_v59 }
 0x4a5   : > { %v727_v60 = vpop.xlane.xlu0 %726  ;;  %v731_v4 = vpop.permute.xlu1 %730 }
 0x4a6   : > { %981 = vrcp.f32 %v727_v60 }
 0x4a8   : > { %v978_v61 = vpop.eup %977 }
 0x4a9   : > { %v379_v62 = vmul.f32 %v978_v61, %v972_v52  ;;  %v556_v63 = vpop.permute.xlu0 %555 }
 0x4ab   : > { %920 = vmatmul.mubr.msk.f32.vlgmr.msra.gmra.mrb[2].mxu0 %vm123_vm1, %v379_v62 }
 0x4ac   : > { %v980_v2 = vpop.eup %979  ;;  %928 = vmatpush3.msra.mxu0 %v556_v63  ;;  %929 = vmatprep.mubr.msk.f32.mxu0 %vm992_vm0, %v991_v0 }
 0x4ad   : > { %v554_v3 = vmul.f32 %v980_v2, %v974_v54  ;;  %937 = vmatprep.subr.mxu0 %v991_v0 }
 0x4af   : > { %930 = vmatmul.mubr.msk.f32.vlgmr.msra.gmra.mrb[4].mxu0 %vm123_vm1, %v554_v3 }
 0x4b0   : > { %v982_v1 = vpop.eup %981  ;;  %938 = vmatpush3.msra.mxu0 %v731_v4  ;;  %939 = vmatprep.mubr.msk.f32.mxu0 %vm992_vm0, %v991_v0 }
 0x4b1   : > { %v729_v5 = vmul.f32 %v982_v1, %v976_v56 }
 0x4b3   : > { %940 = vmatmul.mubr.msk.f32.vlgmr.msra.gmra.mrb[6].mxu0 %vm123_vm1, %v729_v5 }
 0x57e   : > { %v452_v6 = vpop.f32.mrb[2].mxu0 }
 0x57f   : > { %457 = vrot.lane.b32.xlu1 %v452_v6, %s1005_s26  ;;  %v921_v7 = vpop.f32.mrb[3].mxu0 }
 0x582   : > { %v627_v8 = vpop.f32.mrb[4].mxu0 }
 0x583   : > { %632 = vrot.lane.b32.xlu0 %v627_v8, %s1006_s27  ;;  %v931_v9 = vpop.f32.mrb[5].mxu0 }
 0x586   : > { %v802_v10 = vpop.f32.mrb[6].mxu0 }
 0x587   : > { %807 = vrot.lane.b32.xlu1 %v802_v10, %s1007_s28  ;;  %v941_v11 = vpop.f32.mrb[7].mxu0 }
 0x5f1   : > { %v458_v0 = vpop.permute.xlu1 %457 }
 0x5f2   : > { %461 = vst.msk [vmem:[%s1076_s22] sm:$0xff] %vm460_vm3, %v458_v0 }
 0x5f5   : > { %v633_v12 = vpop.permute.xlu0 %632 }
 0x5f6   : > { %636 = vst.msk [vmem:[%s1076_s22] sm:$0xff] %vm635_vm4, %v633_v12 }
 0x5f9   : > { %v808_v13 = vpop.permute.xlu1 %807 }
 0x5fa   : > { %811 = vst.msk [vmem:[%s1076_s22] sm:$0xff] %vm810_vm5, %v808_v13 }
 0x5fb PF: > { %s11_s6 = sadd.s32 1, %s989_s6  }
 0x5fc   : > { %p8_p4 = scmp.ge.s32.totalorder %s11_s6, 4  }
 0x5fe   :  { %10 = sbr.rel (!%p8_p4) target bundleno = 1 (0x1), region = 54 }

// kernel: text_encoder_forward.16
= control target key start
LH: loop header
LB: loop body
LE: loop exit
PB: predicated region body
PF: predicated region fallthrough
CT: control target
= control target key end

     0   :  { %vm27_vm0 = vcmask 261120   ;;  %s216_s1 = inlined_call_operand.vmem [shape: f32[32,128], index: 1, kind: input, shape index: {}]   ;;  %s217_s0 = inlined_call_operand.vmem [shape: f32[16,32], index: 0, kind: input, shape index: {}]   ;;  %s218_s2 = inlined_call_operand.vmem [shape: f32[1,128], index: 2, kind: input, shape index: {}]   ;;  %s219_s3 = inlined_call_operand.vmem [shape: f32[16,128], index: 3, kind: output, shape index: {}]  }
   0x1   :  { %v16_v0 = vld [vmem:[%s216_s1] sm:$0xff]  ;;  %v17_v1 = vld [vmem:[%s216_s1 + $0x8] sm:$0xff]  ;;  %v18_v2 = vld [vmem:[%s216_s1 + $0x10] sm:$0xff] }
   0x2   :  { %v153_v3 = vpack.c.bf16 %v17_v1, %v16_v0  ;;  %v19_v4 = vld [vmem:[%s216_s1 + $0x18] sm:$0xff]  ;;  %v14_v5 = vld [vmem:[%s217_s0] sm:$0xff]  ;;  %v15_v7 = vld [vmem:[%s217_s0 + $0x8] sm:$0xff] }
   0x3   :  { %v157_v6 = vpack.c.bf16 %v19_v4, %v18_v2  ;;  %150 = vmatprep.mubr.msk.f32.mxu0 %vm27_vm0, %v14_v5  ;;  %v131_v8 = vld [vmem:[%s218_s2] ss:$0 sm:$0xff] }
   0x4   :  { %154 = vmatprep.subr.bf16.mxu0 %v153_v3 }
   0x5   :  { %156 = vmatpush3.bf16.msra.mxu0 %v153_v3 }
   0x6   :  { %158 = vmatprep.subr.bf16.mxu0 %v157_v6 }
   0x9   :  { %160 = vmatpush3.bf16.msra.mxu0 %v157_v6 }
   0xc   :  { %151 = vmatmul.mubr.msk.f32.vlgmr.msra.gmra.mrb[0].mxu0 %vm27_vm0, %v15_v7 }
  0xdf   :  { %v152_v9 = vpop.f32.mrb[0].mxu0 }
  0xe0   :  { %v106_v10 = vadd.f32 %v152_v9, %v131_v8  ;;  %v100_v11 = vpop.f32.mrb[1].mxu0 }
  0xe1   :  { %v101_v12 = vadd.f32 %v131_v8, %v100_v11 }
  0xe2   :  { %v135_v13 = vmul.f32 -1.702, %v106_v10 }
  0xe3   :  { %v134_v14 = vmul.f32 -1.702, %v101_v12 }
  0xe4   :  { %v115_v15 = vmul.f32 1.442695, %v135_v13 }
  0xe5   :  { %v113_v16 = vmul.f32 1.442695, %v134_v14 }
  0xe6   :  { %161 = vpow2.f32 %v115_v15 }
  0xe7   :  { %163 = vpow2.f32 %v113_v16 }
  0xf0   :  { %v162_v17 = vpop.eup %161 }
  0xf1   :  { %v164_v18 = vpop.eup %163  ;;  %v118_v19 = vadd.f32 1.0, %v162_v17 }
  0xf2   :  { %v117_v20 = vadd.f32 1.0, %v164_v18 }
  0xf3   :  { %165 = vrcp.f32 %v118_v19 }
  0xf4   :  { %167 = vrcp.f32 %v117_v20 }
  0xfd   :  { %v166_v21 = vpop.eup %165 }
  0xfe   :  { %v168_v22 = vpop.eup %167  ;;  %v124_v23 = vmul.f32 %v166_v21, %v106_v10 }
  0xff   :  { %v123_v24 = vmul.f32 %v168_v22, %v101_v12 }
 0x100   :  { %126 = vst [vmem:[%s219_s3 + $0x8] sm:$0xff] %v124_v23 }
 0x101   :  { %125 = vst [vmem:[%s219_s3] sm:$0xff] %v123_v24 }

// kernel: text_encoder_forward.22
= control target key start
LH: loop header
LB: loop body
LE: loop exit
PB: predicated region body
PF: predicated region fallthrough
CT: control target
= control target key end

     0   :  { %s457_s0 = inlined_call_operand.vmem [shape: f32[16,128], index: 0, kind: input, shape index: {}]   ;;  %s458_s1 = inlined_call_operand.vmem [shape: f32[128,32], index: 1, kind: input, shape index: {}]   ;;  %s459_s2 = inlined_call_operand.vmem [shape: f32[1,32], index: 2, kind: input, shape index: {}]   ;;  %s460_s3 = inlined_call_operand.vmem [shape: f32[16,32], index: 3, kind: input, shape index: {}]   ;;  %s461_s4 = inlined_call_operand.vmem [shape: f32[1,32], index: 4, kind: input, shape index: {}]   ;;  %s462_s5 = inlined_call_operand.vmem [shape: f32[1,32], index: 5, kind: input, shape index: {}]   ;;  %s463_s6 = inlined_call_operand.hbm [shape: f32[16,32], index: 6, kind: output, shape index: {0}]   ;;  %s464_s7 = inlined_call_operand.vmem [shape: f32[16,32], index: 7, kind: output, shape index: {1}]  }
   0x1   :  { %v28_v0 = vld [vmem:[%s458_s1] sm:$0xff]  ;;  %v29_v1 = vld [vmem:[%s458_s1 + $0x8] sm:$0xff]  ;;  %v30_v2 = vld [vmem:[%s458_s1 + $0x10] sm:$0xff] }
   0x2   :  { %v256_v3 = vpack.c.bf16 %v29_v1, %v28_v0  ;;  %v31_v4 = vld [vmem:[%s458_s1 + $0x18] sm:$0xff]  ;;  %v32_v6 = vld [vmem:[%s458_s1 + $0x20] sm:$0xff]  ;;  %v33_v7 = vld [vmem:[%s458_s1 + $0x28] sm:$0xff] }
   0x3   :  { %v260_v5 = vpack.c.bf16 %v31_v4, %v30_v2  ;;  %v264_v8 = vpack.c.bf16 %v33_v7, %v32_v6  ;;  %v26_v9 = vld [vmem:[%s457_s0] sm:$0xff]  ;;  %v34_v10 = vld [vmem:[%s458_s1 + $0x30] sm:$0xff]  ;;  %v35_v11 = vld [vmem:[%s458_s1 + $0x38] sm:$0xff] }
   0x4   :  { %257 = vmatprep.subr.bf16.mxu0 %v256_v3  ;;  %253 = vmatprep.mubr.f32.mxu0 %v26_v9 }
   0x5   :  { %259 = vmatpush3.bf16.msra.mxu0 %v256_v3 }
   0x6   :  { %261 = vmatprep.subr.bf16.mxu0 %v260_v5 }
   0x7   :  { %13 = vsyncpa [#allocation3], 0  ;;  %v268_v12 = vpack.c.bf16 %v35_v11, %v34_v10  ;;  %v36_v13 = vld [vmem:[%s458_s1 + $0x40] sm:$0xff]  ;;  %v37_v14 = vld [vmem:[%s458_s1 + $0x48] sm:$0xff]  ;;  %vm130_vm0 = vcmask 261120  }
   0x8   :  { %v272_v15 = vpack.c.bf16 %v37_v14, %v36_v13  ;;  %v38_v16 = vld [vmem:[%s458_s1 + $0x50] sm:$0xff]  ;;  %v39_v17 = vld [vmem:[%s458_s1 + $0x58] sm:$0xff]  ;;  %v40_v19 = vld [vmem:[%s458_s1 + $0x60] sm:$0xff] }
   0x9   :  { %263 = vmatpush3.bf16.msra.mxu0 %v260_v5  ;;  %v276_v18 = vpack.c.bf16 %v39_v17, %v38_v16  ;;  %v41_v20 = vld [vmem:[%s458_s1 + $0x68] sm:$0xff]  ;;  %v42_v22 = vld [vmem:[%s458_s1 + $0x70] sm:$0xff]  ;;  %v43_v23 = vld [vmem:[%s458_s1 + $0x78] sm:$0xff] }
   0xa   :  { %265 = vmatprep.subr.bf16.mxu0 %v264_v8  ;;  %v280_v21 = vpack.c.bf16 %v41_v20, %v40_v19  ;;  %v284_v24 = vpack.c.bf16 %v43_v23, %v42_v22  ;;  %v27_v25 = vld [vmem:[%s457_s0 + $0x8] sm:$0xff]  ;;  %v200_v26 = vld [vmem:[%s459_s2] ss:$0 sm:$0xff]  ;;  %s319_s0 = smov [#allocation2]  }
   0xb   :  { %v127_v28 = vld [vmem:[%s460_s3 + $0x8] sm:$0xff]  ;;  %v126_v31 = vld [vmem:[%s460_s3] sm:$0xff]  ;;  %s185_s2 = sshll.u32 %s319_s0, 4  ;;  %s186_s2 = int_to_ptr.vmem [resolvable:$true] %s185_s2 }
   0xc   :  { %s295_s3 = scalar_lea.vmem %s186_s2, 256  ;;  %p300_p1 = scmp.lt.s32.totalorder %s186_s2, %s186_s2 }
   0xd   :  { %267 = vmatpush3.bf16.msra.mxu0 %v264_v8  ;;  %p296_p0 = scmp.ne.s32.totalorder %s186_s2, %s295_s3  ;;  %p301_p2 = scmp.lt.s32.totalorder %s295_s3, %s295_s3 }
   0xe   :  { %269 = vmatprep.subr.bf16.mxu0 %v268_v12 }
   0xf   :  { %p302_p3 = por %p301_p2, %p300_p1 }
  0x11   :  { %271 = vmatpush3.bf16.msra.mxu0 %v268_v12  ;;  %p303_p4 = pnand %p302_p3, %p296_p0 }
  0x12   :  { %273 = vmatprep.subr.bf16.mxu0 %v272_v15 }
  0x15   :  { %275 = vmatpush3.bf16.msra.mxu0 %v272_v15 }
  0x16   :  { %277 = vmatprep.subr.bf16.mxu0 %v276_v18 }
  0x19   :  { %279 = vmatpush3.bf16.msra.mxu0 %v276_v18 }
  0x1a   :  { %281 = vmatprep.subr.bf16.mxu0 %v280_v21 }
  0x1d   :  { %283 = vmatpush3.bf16.msra.mxu0 %v280_v21 }
  0x1e   :  { %285 = vmatprep.subr.bf16.mxu0 %v284_v24 }
  0x21   :  { %287 = vmatpush3.bf16.msra.mxu0 %v284_v24 }
  0x24   :  { %254 = vmatmul.mubr.f32.vlgmr.msra.gmra.mrb[0].mxu0 %v27_v25 }
  0xf7   :  { %v255_v27 = vpop.f32.mrb[0].mxu0 }
  0xf8   :  { %v123_v29 = vadd.f32 %v255_v27, %v200_v26  ;;  %v117_v30 = vpop.f32.mrb[1].mxu0 }
  0xf9   :  { %v118_v32 = vadd.f32 %v200_v26, %v117_v30 }
  0xfa   :  { %v129_v33 = vadd.f32 %v127_v28, %v123_v29 }
  0xfb   :  { %v128_v34 = vadd.f32 %v126_v31, %v118_v32 }
  0xfc   :  { %132 = vst.msk [vmem:[#allocation2 + $0x8] sm:$0xff] %vm130_vm0, %v129_v33  ;;  %v136_v36 = vsel %vm130_vm0, %v129_v33, 0.0 }
  0xfd   :  { %131 = vst.msk [vmem:[#allocation2] sm:$0xff] %vm130_vm0, %v128_v34  ;;  %v133_v35 = vsel %vm130_vm0, %v128_v34, 0.0 }
  0xfe   :  { %134 = vadd.xlane.f32.xlu0 %v133_v35 }
 0x102   :  { %137 = vadd.xlane.f32.xlu0 %v136_v36 }
 0x18b   :  { %v135_v37 = vpop.xlane.xlu0 %134 }
 0x18c   :  { %v140_v38 = vmul.f32 0.03125, %v135_v37 }
 0x18e   :  { %v142_v39 = vsub.f32 %v128_v34, %v140_v38 }
 0x18f   :  { %v138_v40 = vpop.xlane.xlu0 %137 }
 0x190   :  { %v141_v41 = vmul.f32 0.03125, %v138_v40  ;;  %v144_v42 = vmul.f32 %v142_v39, %v142_v39 }
 0x192   :  { %v143_v43 = vsub.f32 %v129_v33, %v141_v41  ;;  %v146_v44 = vsel %vm130_vm0, %v144_v42, 0.0 }
 0x193   :  { %147 = vadd.xlane.f32.xlu1 %v146_v44 }
 0x194   :  { %v145_v45 = vmul.f32 %v143_v43, %v143_v43 }
 0x196   :  { %v149_v46 = vsel %vm130_vm0, %v145_v45, 0.0 }
 0x197   :  { %150 = vadd.xlane.f32.xlu1 %v149_v46 }
 0x198   :  { %306 = shalt.err (!%p303_p4)
}
 0x199   :  { %s307_s21 = scalar_lea.hbm %s463_s6, 256 }
 0x19a   :  { %p308_p5 = scmp.ne.s32.totalorder %s463_s6, %s307_s21  ;;  %p311_p6 = scmp.lt.u32.totalorder %s307_s21, %s463_s6 }
 0x19c   :  { %p313_p7 = pnand %p311_p6, %p308_p5 }
 0x19e   :  { %316 = shalt.err (!%p313_p7)
}
 0x19f   :  { %s320_s26 = smov 128   ;;  %s321_s27 = smov 8   ;;  %v201_v54 = vld [vmem:[%s461_s4] ss:$0 sm:$0xff] }
 0x1a0   :  { %191 = dma.vmem_to_hbm [thread:$0]  %s186_s2, 256, %s463_s6, [#allocation3], %s320_s26, %s320_s26, %s321_s27  }
 0x1a1   :  { %v202_v56 = vld [vmem:[%s462_s5] ss:$0 sm:$0xff] }
 0x220   :  { %v148_v47 = vpop.xlane.xlu1 %147 }
 0x221   :  { %v152_v48 = vmul.f32 0.03125, %v148_v47 }
 0x223   :  { %v154_v49 = vadd.f32 1e-05, %v152_v48 }
 0x224   :  { %v151_v50 = vpop.xlane.xlu1 %150 }
 0x225   :  { %291 = vrsqrt.f32 %v154_v49  ;;  %v153_v51 = vmul.f32 0.03125, %v151_v50 }
 0x227   :  { %v155_v52 = vadd.f32 1e-05, %v153_v51 }
 0x229   :  { %293 = vrsqrt.f32 %v155_v52 }
 0x22f   :  { %v292_v53 = vpop.eup %291 }
 0x230   :  { %v158_v55 = vmul.f32 %v292_v53, %v142_v39 }
 0x232   :  { %v167_v57 = vmul.f32 %v201_v54, %v158_v55 }
 0x233   :  { %v294_v58 = vpop.eup %293 }
 0x234   :  { %v176_v59 = vadd.f32 %v202_v56, %v167_v57  ;;  %v159_v60 = vmul.f32 %v294_v58, %v143_v43 }
 0x236   :  { %178 = vst.msk [vmem:[%s464_s7] sm:$0xff] %vm130_vm0, %v176_v59  ;;  %v168_v61 = vmul.f32 %v201_v54, %v159_v60 }
 0x238   :  { %v177_v62 = vadd.f32 %v202_v56, %v168_v61 }
 0x23a   :  { %179 = vst.msk [vmem:[%s464_s7 + $0x8] sm:$0xff] %vm130_vm0, %v177_v62 }
 0x23b   :  { %317 = dma.done.wait [#allocation3], 256  }
 0x23c   :  { %318 = vsyncadd [#allocation3], 4294967040 }
 0x23d   :  { %199 = vsyncpa [#allocation3], 1 }

// kernel: text_encoder_forward.17
= control target key start
LH: loop header
LB: loop body
LE: loop exit
PB: predicated region body
PF: predicated region fallthrough
CT: control target
= control target key end

     0   :  { %vm129_vm0 = vcmask 261120   ;;  %s408_s1 = inlined_call_operand.vmem [shape: f32[128,32], index: 1, kind: input, shape index: {}]   ;;  %s409_s0 = inlined_call_operand.vmem [shape: f32[16,128], index: 0, kind: input, shape index: {}]   ;;  %s410_s2 = inlined_call_operand.vmem [shape: f32[1,32], index: 2, kind: input, shape index: {}]   ;;  %s411_s3 = inlined_call_operand.vmem [shape: f32[16,32], index: 3, kind: input, shape index: {}]   ;;  %s412_s6 = inlined_call_operand.vmem [shape: f32[16,32], index: 6, kind: output, shape index: {0}]   ;;  %s413_s4 = inlined_call_operand.vmem [shape: f32[1,32], index: 4, kind: input, shape index: {}]   ;;  %s414_s5 = inlined_call_operand.vmem [shape: f32[1,32], index: 5, kind: input, shape index: {}]   ;;  %s415_s7 = inlined_call_operand.vmem [shape: f32[16,32], index: 7, kind: output, shape index: {1}]  }
   0x1   :  { %v27_v0 = vld [vmem:[%s408_s1] sm:$0xff]  ;;  %v28_v1 = vld [vmem:[%s408_s1 + $0x8] sm:$0xff]  ;;  %v29_v2 = vld [vmem:[%s408_s1 + $0x10] sm:$0xff] }
   0x2   :  { %v243_v3 = vpack.c.bf16 %v28_v1, %v27_v0  ;;  %v30_v4 = vld [vmem:[%s408_s1 + $0x18] sm:$0xff]  ;;  %v31_v6 = vld [vmem:[%s408_s1 + $0x20] sm:$0xff]  ;;  %v32_v7 = vld [vmem:[%s408_s1 + $0x28] sm:$0xff] }
   0x3   :  { %v247_v5 = vpack.c.bf16 %v30_v4, %v29_v2  ;;  %v251_v8 = vpack.c.bf16 %v32_v7, %v31_v6  ;;  %v25_v9 = vld [vmem:[%s409_s0] sm:$0xff]  ;;  %v33_v10 = vld [vmem:[%s408_s1 + $0x30] sm:$0xff]  ;;  %v34_v11 = vld [vmem:[%s408_s1 + $0x38] sm:$0xff] }
   0x4   :  { %244 = vmatprep.subr.bf16.mxu0 %v243_v3  ;;  %240 = vmatprep.mubr.f32.mxu0 %v25_v9  ;;  %v255_v12 = vpack.c.bf16 %v34_v11, %v33_v10  ;;  %v35_v13 = vld [vmem:[%s408_s1 + $0x40] sm:$0xff]  ;;  %v36_v14 = vld [vmem:[%s408_s1 + $0x48] sm:$0xff]  ;;  %v37_v16 = vld [vmem:[%s408_s1 + $0x50] sm:$0xff] }
   0x5   :  { %246 = vmatpush3.bf16.msra.mxu0 %v243_v3  ;;  %v259_v15 = vpack.c.bf16 %v36_v14, %v35_v13  ;;  %v38_v17 = vld [vmem:[%s408_s1 + $0x58] sm:$0xff]  ;;  %v39_v19 = vld [vmem:[%s408_s1 + $0x60] sm:$0xff]  ;;  %v40_v20 = vld [vmem:[%s408_s1 + $0x68] sm:$0xff] }
   0x6   :  { %248 = vmatprep.subr.bf16.mxu0 %v247_v5  ;;  %v263_v18 = vpack.c.bf16 %v38_v17, %v37_v16  ;;  %v267_v21 = vpack.c.bf16 %v40_v20, %v39_v19  ;;  %v41_v22 = vld [vmem:[%s408_s1 + $0x70] sm:$0xff]  ;;  %v42_v23 = vld [vmem:[%s408_s1 + $0x78] sm:$0xff]  ;;  %v26_v25 = vld [vmem:[%s409_s0 + $0x8] sm:$0xff] }
   0x7   :  { %v271_v24 = vpack.c.bf16 %v42_v23, %v41_v22  ;;  %v187_v26 = vld [vmem:[%s410_s2] ss:$0 sm:$0xff]  ;;  %v126_v28 = vld [vmem:[%s411_s3 + $0x8] sm:$0xff] }
   0x8   :  { %v125_v31 = vld [vmem:[%s411_s3] sm:$0xff] }
   0x9   :  { %250 = vmatpush3.bf16.msra.mxu0 %v247_v5  ;;  %v188_v54 = vld [vmem:[%s413_s4] ss:$0 sm:$0xff] }
   0xa   :  { %252 = vmatprep.subr.bf16.mxu0 %v251_v8  ;;  %v189_v56 = vld [vmem:[%s414_s5] ss:$0 sm:$0xff] }
   0xd   :  { %254 = vmatpush3.bf16.msra.mxu0 %v251_v8 }
   0xe   :  { %256 = vmatprep.subr.bf16.mxu0 %v255_v12 }
  0x11   :  { %258 = vmatpush3.bf16.msra.mxu0 %v255_v12 }
  0x12   :  { %260 = vmatprep.subr.bf16.mxu0 %v259_v15 }
  0x15   :  { %262 = vmatpush3.bf16.msra.mxu0 %v259_v15 }
  0x16   :  { %264 = vmatprep.subr.bf16.mxu0 %v263_v18 }
  0x19   :  { %266 = vmatpush3.bf16.msra.mxu0 %v263_v18 }
  0x1a   :  { %268 = vmatprep.subr.bf16.mxu0 %v267_v21 }
  0x1d   :  { %270 = vmatpush3.bf16.msra.mxu0 %v267_v21 }
  0x1e   :  { %272 = vmatprep.subr.bf16.mxu0 %v271_v24 }
  0x21   :  { %274 = vmatpush3.bf16.msra.mxu0 %v271_v24 }
  0x24   :  { %241 = vmatmul.mubr.f32.vlgmr.msra.gmra.mrb[0].mxu0 %v26_v25 }
  0xf7   :  { %v242_v27 = vpop.f32.mrb[0].mxu0 }
  0xf8   :  { %v122_v29 = vadd.f32 %v242_v27, %v187_v26  ;;  %v116_v30 = vpop.f32.mrb[1].mxu0 }
  0xf9   :  { %v117_v32 = vadd.f32 %v187_v26, %v116_v30 }
  0xfa   :  { %v128_v33 = vadd.f32 %v126_v28, %v122_v29 }
  0xfb   :  { %v127_v34 = vadd.f32 %v125_v31, %v117_v32 }
  0xfc   :  { %131 = vst.msk [vmem:[%s412_s6 + $0x8] sm:$0xff] %vm129_vm0, %v128_v33  ;;  %v135_v36 = vsel %vm129_vm0, %v128_v33, 0.0 }
  0xfd   :  { %130 = vst.msk [vmem:[%s412_s6] sm:$0xff] %vm129_vm0, %v127_v34  ;;  %v132_v35 = vsel %vm129_vm0, %v127_v34, 0.0 }
  0xfe   :  { %133 = vadd.xlane.f32.xlu0 %v132_v35 }
 0x102   :  { %136 = vadd.xlane.f32.xlu0 %v135_v36 }
 0x18b   :  { %v134_v37 = vpop.xlane.xlu0 %133 }
 0x18c   :  { %v139_v38 = vmul.f32 0.03125, %v134_v37 }
 0x18e   :  { %v141_v39 = vsub.f32 %v127_v34, %v139_v38 }
 0x18f   :  { %v137_v40 = vpop.xlane.xlu0 %136 }
 0x190   :  { %v140_v41 = vmul.f32 0.03125, %v137_v40  ;;  %v143_v42 = vmul.f32 %v141_v39, %v141_v39 }
 0x192   :  { %v142_v43 = vsub.f32 %v128_v33, %v140_v41  ;;  %v145_v44 = vsel %vm129_vm0, %v143_v42, 0.0 }
 0x193   :  { %146 = vadd.xlane.f32.xlu1 %v145_v44 }
 0x194   :  { %v144_v45 = vmul.f32 %v142_v43, %v142_v43 }
 0x196   :  { %v148_v46 = vsel %vm129_vm0, %v144_v45, 0.0 }
 0x197   :  { %149 = vadd.xlane.f32.xlu1 %v148_v46 }
 0x220   :  { %v147_v47 = vpop.xlane.xlu1 %146 }
 0x221   :  { %v151_v48 = vmul.f32 0.03125, %v147_v47 }
 0x223   :  { %v153_v49 = vadd.f32 1e-05, %v151_v48 }
 0x224   :  { %v150_v50 = vpop.xlane.xlu1 %149 }
 0x225   :  { %275 = vrsqrt.f32 %v153_v49  ;;  %v152_v51 = vmul.f32 0.03125, %v150_v50 }
 0x227   :  { %v154_v52 = vadd.f32 1e-05, %v152_v51 }
 0x229   :  { %277 = vrsqrt.f32 %v154_v52 }
 0x22f   :  { %v276_v53 = vpop.eup %275 }
 0x230   :  { %v157_v55 = vmul.f32 %v276_v53, %v141_v39 }
 0x232   :  { %v166_v57 = vmul.f32 %v188_v54, %v157_v55 }
 0x233   :  { %v278_v58 = vpop.eup %277 }
 0x234   :  { %v175_v59 = vadd.f32 %v189_v56, %v166_v57  ;;  %v158_v60 = vmul.f32 %v278_v58, %v142_v43 }
 0x236   :  { %177 = vst.msk [vmem:[%s415_s7] sm:$0xff] %vm129_vm0, %v175_v59  ;;  %v167_v61 = vmul.f32 %v188_v54, %v158_v60 }
 0x238   :  { %v176_v62 = vadd.f32 %v189_v56, %v167_v61 }
 0x23a   :  { %178 = vst.msk [vmem:[%s415_s7 + $0x8] sm:$0xff] %vm129_vm0, %v176_v62 }

// kernel: text_encoder_forward.23
= control target key start
LH: loop header
LB: loop body
LE: loop exit
PB: predicated region body
PF: predicated region fallthrough
CT: control target
= control target key end

     0   :  { %v158_v3 = vmov 0.0|0.0   ;;  %vm159_vm0 = vmmov 0   ;;  %v160_v6 = vmov 0.0   ;;  %s204_s0 = inlined_call_operand.vmem [shape: f32[2,32], index: 0, kind: input, shape index: {}]   ;;  %s205_s1 = inlined_call_operand.vmem [shape: f32[32,32], index: 1, kind: input, shape index: {}]   ;;  %s206_s2 = inlined_call_operand.hbm [shape: f32[2,32], index: 2, kind: output, shape index: {}]  }
   0x1   :  { %v13_v0 = vld [vmem:[%s205_s1] sm:$0xff]  ;;  %v14_v1 = vld [vmem:[%s205_s1 + $0x8] sm:$0xff]  ;;  %v15_v2 = vld [vmem:[%s205_s1 + $0x10] sm:$0xff]  ;;  %124 = vmatprep.subr.bf16.mxu0 %v158_v3  ;;  %121 = vmatprep.mubr.msk.f32.mxu0 %vm159_vm0, %v160_v6 }
   0x2   :  { %v125_v4 = vpack.c.bf16 %v14_v1, %v13_v0  ;;  %v16_v5 = vld [vmem:[%s205_s1 + $0x18] sm:$0xff] }
   0x3   :  { %7 = vsyncpa [#allocation3], 0  ;;  %v128_v7 = vpack.c.bf16 %v16_v5, %v15_v2  ;;  %v12_v8 = vld [vmem:[%s204_s0] sm:$0x3]  ;;  %vm17_vm1 = vcmask 261120   ;;  %s161_s19 = smov [#allocation2]  }
   0x4   :  { %126 = vmatpush3.bf16.msra.mxu0 %v125_v4  ;;  %s99_s20 = sshll.u32 %s161_s19, 4  ;;  %vm91_vm2 = vcmask 254976   ;;  %s100_s20 = int_to_ptr.vmem [resolvable:$true] %s99_s20 }
   0x5   :  { %127 = vmatprep.subr.bf16.mxu0 %v158_v3  ;;  %s134_s1 = scalar_lea.vmem %s100_s20, 32  ;;  %p139_p1 = scmp.lt.s32.totalorder %s100_s20, %s100_s20 }
   0x6   :  { %p135_p0 = scmp.ne.s32.totalorder %s100_s20, %s134_s1  ;;  %p140_p2 = scmp.lt.s32.totalorder %s134_s1, %s134_s1 }
   0x8   :  { %129 = vmatpush3.bf16.msra.mxu0 %v128_v7  ;;  %p141_p3 = por %p140_p2, %p139_p1 }
   0xa   :  { %p142_p4 = pnand %p141_p3, %p135_p0 }
   0xb   :  { %122 = vmatmul.mubr.msk.f32.vlgmr.msra.gmra.mrb[0].mxu0 %vm17_vm1, %v12_v8 }
  0xde   :  { %v87_v9 = vpop.f32.mrb[0].mxu0 }
  0xdf   :  { %92 = vst.msk [vmem:[#allocation2] sm:$0x3] %vm91_vm2, %v87_v9  ;;  %v123_v10 = vpop.f32.mrb[1].mxu0 }
  0xe0   :  { %145 = shalt.err (!%p142_p4)
}
  0xe1   :  { %s146_s0 = scalar_lea.hbm %s206_s2, 32 }
  0xe2   :  { %p147_p5 = scmp.ne.s32.totalorder %s206_s2, %s146_s0  ;;  %p150_p6 = scmp.lt.u32.totalorder %s146_s0, %s206_s2 }
  0xe4   :  { %p152_p7 = pnand %p150_p6, %p147_p5 }
  0xe6   :  { %155 = shalt.err (!%p152_p7)
}
  0xe7   :  { %102 = dma.vmem_to_hbm [thread:$0]  %s100_s20, 32, %s206_s2, [#allocation3]  }
  0xe8   :  { %156 = dma.done.wait [#allocation3], 32  }
  0xe9   :  { %157 = vsyncadd [#allocation3], 4294967264 }
  0xea   :  { %106 = vsyncpa [#allocation3], 1 }

</bundles_post_ra>
